<compile_context>
chip_gen: v7x
topology: tpu7x:2x2x1
jax: 0.10.0
libtpu: 0.0.40
codegen_flags: <defaults>
</compile_context>

<pallas_src>
import jax
import jax.numpy as jnp
from jax.experimental import pallas as pl
from jax.experimental.pallas import tpu as pltpu

IN_FEATURES = 784
HIDDEN = 200
HIDDEN_PAD = 256  # lane-friendly hidden width (zero-padded; see padding note below)


def _round_up(x, m):
    return (x + m - 1) // m * m


def _sigmoid(z):
    # Mathematically identical to 1/(1+exp(-z)); tanh stays on the EUP slot.
    return 0.5 * (jnp.tanh(0.5 * z) + 1.0)


def discriminator_kernel(x_ref, w1_ref, b1_ref, w2_ref, b2_ref, o_ref):
    # Layer 1 on the MXU: (TB, 784) @ (784, 256) -> (TB, 256), f32 accumulation.
    h = jnp.dot(x_ref[...], w1_ref[...], preferred_element_type=jnp.float32)
    h = _sigmoid(h + b1_ref[...])                       # b1 (1,256): row broadcast
    # Layer 2 off the MXU: VPU multiply + lane reduction -> (TB, 1).
    y = jnp.sum(h * w2_ref[...], axis=-1, keepdims=True)
    o_ref[...] = _sigmoid(y + b2_ref[...]).astype(o_ref.dtype)


def discriminator_forward(x, w1, b1, w2, b2, *, block_b=1024):
    """x: (B, 784) f32; w1: (784, 200); b1: (1, 200); w2: (200, 1); b2: (1, 1).

    Returns (B, 1) f32 = sigmoid(sigmoid(x @ w1 + b1) @ w2 + b2).
    block_b: batch tile. Sweep 1024-4096 on v7x (3.2 TB/s HBM); cap ~1024 on
    v5e (16 MiB scoped-VMEM default) since x is read in f32.
    """
    B, din = x.shape
    assert din == IN_FEATURES
    h = w1.shape[1]
    assert h == HIDDEN

    block_b = _round_up(block_b, 128)
    TB = min(block_b, _round_up(max(B, 1), 128))
    b_pad = _round_up(B, TB)
    n_tiles = b_pad // TB

    # --- layout plumbing (cheap; fuses into the surrounding jit) -------------
    # Hidden padding 200 -> 256: b1 AND w2 padding rows MUST be zero together;
    # padded units then emit sigmoid(0)=0.5 which the zero w2 rows annihilate.
    w1p = jnp.pad(w1, ((0, 0), (0, HIDDEN_PAD - h))).astype(jnp.float32)   # (784, 256)
    b1p = jnp.pad(b1, ((0, 0), (0, HIDDEN_PAD - h))).astype(jnp.float32)   # (1, 256)
    w2r = jnp.pad(w2, ((0, HIDDEN_PAD - h), (0, 0))).reshape(
        1, HIDDEN_PAD).astype(jnp.float32)                                 # (1, 256)
    b2c = b2.reshape(1, 1).astype(jnp.float32)                             # (1, 1)

    # Natural row-major layout; only the batch axis is padded (one contiguous
    # DMA per (TB, 784) tile, no extra HBM pre-pass).
    xp = jnp.pad(x.astype(jnp.float32), ((0, b_pad - B), (0, 0)))          # (b_pad, 784)

    cost = pl.CostEstimate(
        flops=2 * b_pad * IN_FEATURES * HIDDEN_PAD + 3 * b_pad * HIDDEN_PAD,
        transcendentals=b_pad * (HIDDEN_PAD + 1),
        bytes_accessed=(b_pad * IN_FEATURES * 4            # x f32 (dominant stream)
                        + IN_FEATURES * HIDDEN_PAD * 4     # W1 f32 (read once, resident)
                        + (2 * HIDDEN_PAD + 1) * 4         # b1, w2, b2
                        + b_pad * 4),                      # output f32
    )

    out = pl.pallas_call(
        discriminator_kernel,
        out_shape=jax.ShapeDtypeStruct((b_pad, 1), jnp.float32),
        grid=(n_tiles,),
        in_specs=[
            pl.BlockSpec((TB, IN_FEATURES), lambda i: (i, 0)),           # x tiles
            pl.BlockSpec((IN_FEATURES, HIDDEN_PAD), lambda i: (0, 0)),   # W1 resident
            pl.BlockSpec((1, HIDDEN_PAD), lambda i: (0, 0)),             # b1 resident
            pl.BlockSpec((1, HIDDEN_PAD), lambda i: (0, 0)),             # w2 row resident
            pl.BlockSpec((1, 1), lambda i: (0, 0)),                      # b2 resident
        ],
        out_specs=pl.BlockSpec((TB, 1), lambda i: (i, 0)),
        compiler_params=pltpu.CompilerParams(
            dimension_semantics=("parallel",),
            vmem_limit_bytes=64 * 1024 * 1024,
        ),
        cost_estimate=cost,
    )(xp, w1p, b1p, w2r, b2c)

    return out[:B]


def init_params(key):
    """Deterministic init matching nn.Linear shapes (PyTorch-style uniform).

    Weights are stored as (in_features, out_features), i.e. transposed vs
    PyTorch's (out, in), so y = x @ W + b.
    """
    k1, k2, k3, k4 = jax.random.split(key, 4)
    in1, out1 = IN_FEATURES, HIDDEN
    in2, out2 = HIDDEN, 1
    bound1 = 1.0 / jnp.sqrt(in1)
    bound2 = 1.0 / jnp.sqrt(in2)
    w1 = jax.random.uniform(k1, (in1, out1), jnp.float32, -bound1, bound1)
    b1 = jax.random.uniform(k2, (1, out1), jnp.float32, -bound1, bound1)
    w2 = jax.random.uniform(k3, (in2, out2), jnp.float32, -bound2, bound2)
    b2 = jax.random.uniform(k4, (1, out2), jnp.float32, -bound2, bound2)
    return w1, b1, w2, b2


# TODO(synk): trainit (MSELoss + Adam step) and plot_progress are host-side
# training utilities, not part of the forward pass; only forward is implemented.

if __name__ == "__main__":
    key = jax.random.PRNGKey(0)
    kx, kp = jax.random.split(key)

    B = 8  # small batch (MNIST-like flat input)
    x = jax.random.uniform(kx, (B, IN_FEATURES), jnp.float32)
    w1, b1, w2, b2 = init_params(kp)

    fwd = jax.jit(discriminator_forward)
    out = jax.block_until_ready(fwd(x, w1, b1, w2, b2))
    assert out.shape == (B, 1)

    # Full-f32 module semantics. Tolerance covers the MXU's default f32
    # matmul precision on TPU (well under 1e-2 at these magnitudes).
    h32 = jax.nn.sigmoid(x @ w1 + b1)
    y32 = jax.nn.sigmoid(h32 @ w2 + b2)
    assert jnp.allclose(out, y32, atol=1e-2, rtol=1e-2), (
        float(jnp.max(jnp.abs(out - y32))))

    print("KERNEL_OK")
</pallas_src>

<mosaic_0001>
module attributes {stable_mosaic.version = 11 : i64} {
  func.func @discriminator_kernel(%arg0: i32, %arg1: memref<128x784xf32, #tpu.memory_space<vmem>>, %arg2: memref<784x256xf32, #tpu.memory_space<vmem>>, %arg3: memref<1x256xf32, #tpu.memory_space<vmem>>, %arg4: memref<1x256xf32, #tpu.memory_space<vmem>>, %arg5: memref<1x1xf32, #tpu.memory_space<vmem>>, %arg6: memref<128x1xf32, #tpu.memory_space<vmem>>) attributes {dimension_semantics = [#tpu.dimension_semantics<parallel>], iteration_bounds = array<i64: 1>, scalar_prefetch = 0 : i64, scratch_operands = 0 : i64, tpu.core_type = #tpu.core_type<tc>, window_params = [{transform_indices = @transform_0, window_bounds = array<i64: 128, 784>}, {pipeline_mode = #tpu.pipeline_mode<synchronous>, transform_indices = @transform_1, window_bounds = array<i64: 784, 256>}, {pipeline_mode = #tpu.pipeline_mode<synchronous>, transform_indices = @transform_2, window_bounds = array<i64: 1, 256>}, {pipeline_mode = #tpu.pipeline_mode<synchronous>, transform_indices = @transform_3, window_bounds = array<i64: 1, 256>}, {pipeline_mode = #tpu.pipeline_mode<synchronous>, transform_indices = @transform_4, window_bounds = array<i64: 1, 1>}, {transform_indices = @transform_5, window_bounds = array<i64: 128, 1>}]} {
    %c0 = arith.constant 0 : index
    %c0_0 = arith.constant 0 : index
    %0 = vector.load %arg1[%c0, %c0_0] : memref<128x784xf32, #tpu.memory_space<vmem>>, vector<128x784xf32>
    %c0_1 = arith.constant 0 : index
    %c0_2 = arith.constant 0 : index
    %1 = vector.load %arg2[%c0_1, %c0_2] : memref<784x256xf32, #tpu.memory_space<vmem>>, vector<784x256xf32>
    %cst = arith.constant dense<0.000000e+00> : vector<128x256xf32>
    %2 = tpu.matmul %0, %1, %cst {dimension_numbers = #tpu.dot_dimension_numbers<[1], [0], [0], [1], [0, 0, 1, 1], [], []>} : vector<128x784xf32>, vector<784x256xf32>, vector<128x256xf32> -> vector<128x256xf32>
    %c0_3 = arith.constant 0 : index
    %c0_4 = arith.constant 0 : index
    %3 = vector.load %arg3[%c0_3, %c0_4] : memref<1x256xf32, #tpu.memory_space<vmem>>, vector<1x256xf32>
    %4 = vector.broadcast %3 : vector<1x256xf32> to vector<128x256xf32>
    %5 = arith.addf %2, %4 : vector<128x256xf32>
    %cst_5 = arith.constant 5.000000e-01 : f32
    %6 = vector.broadcast %cst_5 : f32 to vector<128x256xf32>
    %7 = arith.mulf %6, %5 : vector<128x256xf32>
    %8 = math.tanh %7 : vector<128x256xf32>
    %cst_6 = arith.constant 1.000000e+00 : f32
    %9 = vector.broadcast %cst_6 : f32 to vector<128x256xf32>
    %10 = arith.addf %8, %9 : vector<128x256xf32>
    %cst_7 = arith.constant 5.000000e-01 : f32
    %11 = vector.broadcast %cst_7 : f32 to vector<128x256xf32>
    %12 = arith.mulf %11, %10 : vector<128x256xf32>
    %c0_8 = arith.constant 0 : index
    %c0_9 = arith.constant 0 : index
    %13 = vector.load %arg4[%c0_8, %c0_9] : memref<1x256xf32, #tpu.memory_space<vmem>>, vector<1x256xf32>
    %14 = vector.broadcast %13 : vector<1x256xf32> to vector<128x256xf32>
    %15 = arith.mulf %12, %14 : vector<128x256xf32>
    %cst_10 = arith.constant dense<0.000000e+00> : vector<128xf32>
    %16 = vector.multi_reduction <add>, %15, %cst_10 [1] : vector<128x256xf32> to vector<128xf32>
    %17 = vector.shape_cast %16 : vector<128xf32> to vector<128x1xf32>
    %c0_11 = arith.constant 0 : index
    %c0_12 = arith.constant 0 : index
    %18 = vector.load %arg5[%c0_11, %c0_12] : memref<1x1xf32, #tpu.memory_space<vmem>>, vector<1x1xf32>
    %19 = vector.broadcast %18 : vector<1x1xf32> to vector<128x1xf32>
    %20 = arith.addf %17, %19 : vector<128x1xf32>
    %cst_13 = arith.constant 5.000000e-01 : f32
    %21 = vector.broadcast %cst_13 : f32 to vector<128x1xf32>
    %22 = arith.mulf %21, %20 : vector<128x1xf32>
    %23 = math.tanh %22 : vector<128x1xf32>
    %cst_14 = arith.constant 1.000000e+00 : f32
    %24 = vector.broadcast %cst_14 : f32 to vector<128x1xf32>
    %25 = arith.addf %23, %24 : vector<128x1xf32>
    %cst_15 = arith.constant 5.000000e-01 : f32
    %26 = vector.broadcast %cst_15 : f32 to vector<128x1xf32>
    %27 = arith.mulf %26, %25 : vector<128x1xf32>
    %c0_16 = arith.constant 0 : index
    %c0_17 = arith.constant 0 : index
    %28 = vector.load %arg6[%c0_16, %c0_17] : memref<128x1xf32, #tpu.memory_space<vmem>>, vector<128x1xf32>
    tpu.vector_store %arg6[%c0_16, %c0_17], %27 {strides = array<i32>} : memref<128x1xf32, #tpu.memory_space<vmem>>, vector<128x1xf32>,
    return
  }
  func.func @transform_0(%arg0: i32) -> (i32, i32) {
    %c0_i32 = arith.constant 0 : i32
    %c0_i32_0 = arith.constant 0 : i32
    return %arg0, %c0_i32 : i32, i32
  }
  func.func @transform_1(%arg0: i32) -> (i32, i32) {
    %c0_i32 = arith.constant 0 : i32
    %c0_i32_0 = arith.constant 0 : i32
    %c0_i32_1 = arith.constant 0 : i32
    return %c0_i32, %c0_i32_0 : i32, i32
  }
  func.func @transform_2(%arg0: i32) -> (i32, i32) {
    %c0_i32 = arith.constant 0 : i32
    %c0_i32_0 = arith.constant 0 : i32
    %c0_i32_1 = arith.constant 0 : i32
    return %c0_i32, %c0_i32_0 : i32, i32
  }
  func.func @transform_3(%arg0: i32) -> (i32, i32) {
    %c0_i32 = arith.constant 0 : i32
    %c0_i32_0 = arith.constant 0 : i32
    %c0_i32_1 = arith.constant 0 : i32
    return %c0_i32, %c0_i32_0 : i32, i32
  }
  func.func @transform_4(%arg0: i32) -> (i32, i32) {
    %c0_i32 = arith.constant 0 : i32
    %c0_i32_0 = arith.constant 0 : i32
    %c0_i32_1 = arith.constant 0 : i32
    return %c0_i32, %c0_i32_0 : i32, i32
  }
  func.func @transform_5(%arg0: i32) -> (i32, i32) {
    %c0_i32 = arith.constant 0 : i32
    %c0_i32_0 = arith.constant 0 : i32
    return %arg0, %c0_i32 : i32, i32
  }
}

</mosaic_0001>

<bundles_post_ra>
// kernel: discriminator_forward.1
= control target key start
LH: loop header
LB: loop body
LE: loop exit
PB: predicated region body
PF: predicated region fallthrough
CT: control target
= control target key end

     0   :  { %s2248_s0 = inlined_call_operand.hbm [shape: f32[128,784], index: 0, kind: input, shape index: {}]   ;;  %s2249_s1 = inlined_call_operand.hbm [shape: f32[784,256], index: 1, kind: input, shape index: {}]   ;;  %s2250_s2 = inlined_call_operand.hbm [shape: f32[1,256], index: 2, kind: input, shape index: {}]   ;;  %s2251_s3 = inlined_call_operand.hbm [shape: f32[1,256], index: 3, kind: input, shape index: {}]   ;;  %s2252_s4 = inlined_call_operand.<no memory space> [shape: f32[1,1], index: 4, kind: input, shape index: {}]   ;;  %s2253_s5 = inlined_call_operand.hbm [shape: f32[128,1], index: 5, kind: output, shape index: {}]  }
   0x1   :  { %v10_v0 = vstv %s2252_s4 }
   0x2   :  { %11 = vst [vmem:[#allocation2] sm:$0x1] %v10_v0 }
   0x3   :  { %12 = vsyncpa [#allocation4], 0 }
   0x4   :  { %13 = vsyncpa [#allocation7], 0 }
   0x5   :  { %14 = vsyncpa [#allocation10], 0 }
   0x6   :  { %15 = vsyncpa [#allocation5], 0  ;;  %s1997_s20 = smov [#allocation6]   ;;  %s1879_s24 = scalar_lea.hbm %s2249_s1, 25088 }
   0x7   :  { %s33_s21 = sshll.u32 %s1997_s20, 4  ;;  %p1880_p0 = scmp.ne.s32.totalorder %s2249_s1, %s1879_s24  ;;  %s34_s21 = int_to_ptr.vmem [resolvable:$true] %s33_s21 }
   0x8   :  { %p1883_p1 = scmp.lt.u32.totalorder %s1879_s24, %s2249_s1 }
   0xa   :  { %p1885_p2 = pnand %p1883_p1, %p1880_p0 }
   0xc   :  { %1888 = shalt.err (!%p1885_p2)
}
   0xd   :  { %s1889_s4 = scalar_lea.vmem %s34_s21, 25088  ;;  %p1894_p4 = scmp.lt.s32.totalorder %s34_s21, %s34_s21 }
   0xe   :  { %p1890_p3 = scmp.ne.s32.totalorder %s34_s21, %s1889_s4  ;;  %p1895_p5 = scmp.lt.s32.totalorder %s1889_s4, %s1889_s4 }
  0x10   :  { %p1896_p6 = por %p1895_p5, %p1894_p4 }
  0x12   :  { %p1897_p7 = pnand %p1896_p6, %p1890_p3 }
  0x14   :  { %1900 = shalt.err (!%p1897_p7)
}
  0x15   :  { %s1998_s29 = smov 256   ;;  %s1999_s30 = smov 16  }
  0x16   :  { %39 = dma.hbm_to_vmem [thread:$0]  %s2249_s1, 25088, %s34_s21, [#allocation7], %s1998_s29, %s1998_s29, %s1999_s30  }
  0x17   :  { %s2000_s8 = smov [#allocation3]   ;;  %s1901_s12 = scalar_lea.hbm %s2248_s0, 14336 }
  0x18   :  { %s21_s9 = sshll.u32 %s2000_s8, 4  ;;  %p1902_p8 = scmp.ne.s32.totalorder %s2248_s0, %s1901_s12  ;;  %s22_s9 = int_to_ptr.vmem [resolvable:$true] %s21_s9 }
  0x19   :  { %p1905_p9 = scmp.lt.u32.totalorder %s1901_s12, %s2248_s0 }
  0x1b   :  { %p1907_p10 = pnand %p1905_p9, %p1902_p8 }
  0x1d   :  { %1910 = shalt.err (!%p1907_p10)
}
  0x1e   :  { %s1911_s17 = scalar_lea.vmem %s22_s9, 14336  ;;  %p1916_p12 = scmp.lt.s32.totalorder %s22_s9, %s22_s9 }
  0x1f   :  { %p1912_p11 = scmp.ne.s32.totalorder %s22_s9, %s1911_s17  ;;  %p1917_p13 = scmp.lt.s32.totalorder %s1911_s17, %s1911_s17 }
  0x21   :  { %p1918_p0 = por %p1917_p13, %p1916_p12 }
  0x23   :  { %p1919_p1 = pnand %p1918_p0, %p1912_p11 }
  0x25   :  { %1922 = shalt.err (!%p1919_p1)
}
  0x26   :  { %s2001_s1 = smov 896   ;;  %s2002_s18 = smov 56  }
  0x27   :  { %27 = dma.hbm_to_vmem [thread:$0]  %s2248_s0, 14336, %s22_s9, [#allocation4], %s2001_s1, %s2001_s1, %s2002_s18  }
  0x28   :  { %s2003_s21 = smov [#allocation8]   ;;  %s2004_s23 = smov [#allocation9]  }
  0x29   :  { %s46_s22 = sshll.u32 %s2003_s21, 4  ;;  %s56_s24 = sshll.u32 %s2004_s23, 4  ;;  %s47_s22 = int_to_ptr.vmem [resolvable:$true] %s46_s22  ;;  %s57_s24 = int_to_ptr.vmem [resolvable:$true] %s56_s24 }
  0x2a   :  { %s1923_s27 = scalar_lea.hbm %s2250_s2, 32 }
  0x2b   :  { %p1924_p2 = scmp.ne.s32.totalorder %s2250_s2, %s1923_s27  ;;  %p1927_p3 = scmp.lt.u32.totalorder %s1923_s27, %s2250_s2 }
  0x2d   :  { %p1929_p4 = pnand %p1927_p3, %p1924_p2 }
  0x2f   :  { %1932 = shalt.err (!%p1929_p4)
}
  0x30   :  { %s1933_s0 = scalar_lea.vmem %s47_s22, 32  ;;  %p1938_p6 = scmp.lt.s32.totalorder %s47_s22, %s47_s22 }
  0x31   :  { %p1934_p5 = scmp.ne.s32.totalorder %s47_s22, %s1933_s0  ;;  %p1939_p7 = scmp.lt.s32.totalorder %s1933_s0, %s1933_s0 }
  0x33   :  { %p1940_p8 = por %p1939_p7, %p1938_p6 }
  0x35   :  { %p1941_p9 = pnand %p1940_p8, %p1934_p5 }
  0x37   :  { %1944 = shalt.err (!%p1941_p9)
}
  0x38   :  { %49 = dma.hbm_to_vmem [thread:$0]  %s2250_s2, 32, %s47_s22, [#allocation7]  }
  0x39   :  { %s1945_s10 = scalar_lea.hbm %s2251_s3, 32 }
  0x3a   :  { %p1946_p10 = scmp.ne.s32.totalorder %s2251_s3, %s1945_s10  ;;  %p1949_p11 = scmp.lt.u32.totalorder %s1945_s10, %s2251_s3 }
  0x3c   :  { %p1951_p12 = pnand %p1949_p11, %p1946_p10 }
  0x3e   :  { %1954 = shalt.err (!%p1951_p12)
}
  0x3f   :  { %s1955_s15 = scalar_lea.vmem %s57_s24, 32  ;;  %p1960_p0 = scmp.lt.s32.totalorder %s57_s24, %s57_s24 }
  0x40   :  { %p1956_p13 = scmp.ne.s32.totalorder %s57_s24, %s1955_s15  ;;  %p1961_p1 = scmp.lt.s32.totalorder %s1955_s15, %s1955_s15 }
  0x42   :  { %p1962_p2 = por %p1961_p1, %p1960_p0 }
  0x44   :  { %p1963_p3 = pnand %p1962_p2, %p1956_p13 }
  0x46   :  { %1966 = shalt.err (!%p1963_p3)
}
  0x47   :  { %59 = dma.hbm_to_vmem [thread:$0]  %s2251_s3, 32, %s57_s24, [#allocation10]  }
  0x48   :  { %1989 = dma.done.wait [#allocation4], 14336  }
  0x49   :  { %1990 = vsyncadd [#allocation4], 4294952960 }
  0x4a   :  { %1991 = dma.done.wait [#allocation7], 25120  }
  0x4b   :  { %1992 = vsyncadd [#allocation7], 4294942176 }
  0x4c   :  { %1993 = dma.done.wait [#allocation10], 32  }
  0x4d   :  { %1994 = vsyncadd [#allocation10], 4294967264  ;;  %v187_v1 = vld [vmem:[#allocation6 + $0x8] sm:$0xff]  ;;  %v189_v2 = vld [vmem:[#allocation6 + $0x18] sm:$0xff]  ;;  %vm394_vm0 = vcmask 130048   ;;  %vm1394_vm1 = vcmask 7168  }
  0x4e   :  { %v315_v3 = vld [vmem:[#allocation6 + $0x408] sm:$0xff]  ;;  %v1447_v4 = vpack.c.bf16 %v189_v2, %v187_v1  ;;  %v317_v5 = vld [vmem:[#allocation6 + $0x418] sm:$0xff]  ;;  %v186_v6 = vld [vmem:[#allocation6] sm:$0xff]  ;;  %s2006_s3 = smov [#allocation11]  }
  0x4f   :  { %v188_v7 = vld [vmem:[#allocation6 + $0x10] sm:$0xff]  ;;  %v1575_v8 = vpack.c.bf16 %v317_v5, %v315_v3  ;;  %v314_v10 = vld [vmem:[#allocation6 + $0x400] sm:$0xff]  ;;  %v191_v12 = vld [vmem:[#allocation6 + $0x28] sm:$0xff]  ;;  %s1416_s17 = sshll.u32 %s2006_s3, 4  ;;  %s1417_s17 = int_to_ptr.vmem [resolvable:$true] %s1416_s17 }
  0x50   :  { %v1449_v9 = vpack.c.bf16 %v188_v7, %v186_v6  ;;  %v316_v11 = vld [vmem:[#allocation6 + $0x410] sm:$0xff]  ;;  %1448 = vmatprep.subr.bf16.mxu1 %v1447_v4  ;;  %v193_v14 = vld [vmem:[#allocation6 + $0x38] sm:$0xff]  ;;  %v319_v15 = vld [vmem:[#allocation6 + $0x428] sm:$0xff]  ;;  %s1967_s1 = scalar_lea.vmem %s1417_s17, 2048  ;;  %p1972_p5 = scmp.lt.s32.totalorder %s1417_s17, %s1417_s17 }
  0x51   :  { %v1577_v13 = vpack.c.bf16 %v316_v11, %v314_v10  ;;  %v321_v16 = vld [vmem:[#allocation6 + $0x438] sm:$0xff]  ;;  %1576 = vmatprep.subr.bf16.mxu0 %v1575_v8  ;;  %v1451_v17 = vpack.c.bf16 %v193_v14, %v191_v12  ;;  %v190_v19 = vld [vmem:[#allocation6 + $0x20] sm:$0xff]  ;;  %v192_v20 = vld [vmem:[#allocation6 + $0x30] sm:$0xff]  ;;  %p1968_p4 = scmp.ne.s32.totalorder %s1417_s17, %s1967_s1  ;;  %p1973_p6 = scmp.lt.s32.totalorder %s1967_s1, %s1967_s1 }
  0x52   :  { %1450 = vmatpush1.bf16.msra.mxu1 %v1449_v9  ;;  %v1579_v18 = vpack.c.bf16 %v321_v16, %v319_v15  ;;  %v318_v21 = vld [vmem:[#allocation6 + $0x420] sm:$0xff]  ;;  %v1453_v22 = vpack.c.bf16 %v192_v20, %v190_v19  ;;  %v320_v23 = vld [vmem:[#allocation6 + $0x430] sm:$0xff]  ;;  %v195_v24 = vld [vmem:[#allocation6 + $0x48] sm:$0xff] }
  0x53   :  { %1578 = vmatpush1.bf16.msra.mxu0 %v1577_v13  ;;  %v197_v25 = vld [vmem:[#allocation6 + $0x58] sm:$0xff]  ;;  %1452 = vmatprep.subr.bf16.mxu1 %v1451_v17  ;;  %v1581_v26 = vpack.c.bf16 %v320_v23, %v318_v21  ;;  %v323_v28 = vld [vmem:[#allocation6 + $0x448] sm:$0xff]  ;;  %v194_v30 = vld [vmem:[#allocation6 + $0x40] sm:$0xff]  ;;  %p1974_p7 = por %p1973_p6, %p1972_p5 }
  0x54   :  { %1580 = vmatprep.subr.bf16.mxu0 %v1579_v18  ;;  %v1455_v27 = vpack.c.bf16 %v197_v25, %v195_v24  ;;  %v325_v29 = vld [vmem:[#allocation6 + $0x458] sm:$0xff]  ;;  %v196_v32 = vld [vmem:[#allocation6 + $0x50] sm:$0xff]  ;;  %v322_v33 = vld [vmem:[#allocation6 + $0x440] sm:$0xff] }
  0x55   :  { %v1583_v31 = vpack.c.bf16 %v325_v29, %v323_v28  ;;  %v324_v34 = vld [vmem:[#allocation6 + $0x450] sm:$0xff]  ;;  %v1457_v35 = vpack.c.bf16 %v196_v32, %v194_v30  ;;  %v199_v36 = vld [vmem:[#allocation6 + $0x68] sm:$0xff]  ;;  %v201_v37 = vld [vmem:[#allocation6 + $0x78] sm:$0xff]  ;;  %p1975_p8 = pnand %p1974_p7, %p1968_p4 }
  0x56   :  { %1454 = vmatpush1.bf16.msra.mxu1 %v1453_v22  ;;  %v327_v38 = vld [vmem:[#allocation6 + $0x468] sm:$0xff]  ;;  %v1585_v39 = vpack.c.bf16 %v324_v34, %v322_v33  ;;  %v1459_v40 = vpack.c.bf16 %v201_v37, %v199_v36  ;;  %v329_v41 = vld [vmem:[#allocation6 + $0x478] sm:$0xff]  ;;  %v198_v42 = vld [vmem:[#allocation6 + $0x60] sm:$0xff] }
  0x57   :  { %1582 = vmatpush1.bf16.msra.mxu0 %v1581_v26  ;;  %1456 = vmatprep.subr.bf16.mxu1 %v1455_v27  ;;  %v200_v43 = vld [vmem:[#allocation6 + $0x70] sm:$0xff]  ;;  %v1587_v44 = vpack.c.bf16 %v329_v41, %v327_v38  ;;  %v326_v45 = vld [vmem:[#allocation6 + $0x460] sm:$0xff]  ;;  %v203_v47 = vld [vmem:[#allocation6 + $0x88] sm:$0xff] }
  0x58   :  { %1584 = vmatprep.subr.bf16.mxu0 %v1583_v31  ;;  %v328_v46 = vld [vmem:[#allocation6 + $0x470] sm:$0xff]  ;;  %v205_v48 = vld [vmem:[#allocation6 + $0x98] sm:$0xff]  ;;  %v331_v49 = vld [vmem:[#allocation6 + $0x488] sm:$0xff]  ;;  %v1461_v51 = vpack.c.bf16 %v200_v43, %v198_v42 }
  0x59   :  { %v333_v50 = vld [vmem:[#allocation6 + $0x498] sm:$0xff]  ;;  %v1589_v52 = vpack.c.bf16 %v328_v46, %v326_v45  ;;  %v1463_v53 = vpack.c.bf16 %v205_v48, %v203_v47  ;;  %v202_v54 = vld [vmem:[#allocation6 + $0x80] sm:$0xff]  ;;  %v204_v55 = vld [vmem:[#allocation6 + $0x90] sm:$0xff] }
  0x5a   :  { %1458 = vmatpush1.bf16.msra.mxu1 %v1457_v35  ;;  %v330_v56 = vld [vmem:[#allocation6 + $0x480] sm:$0xff]  ;;  %v1591_v57 = vpack.c.bf16 %v333_v50, %v331_v49  ;;  %v332_v58 = vld [vmem:[#allocation6 + $0x490] sm:$0xff]  ;;  %v207_v59 = vld [vmem:[#allocation6 + $0xa8] sm:$0xff]  ;;  %v1465_v63 = vpack.c.bf16 %v204_v55, %v202_v54 }
  0x5b   :  { %1586 = vmatpush1.bf16.msra.mxu0 %v1585_v39  ;;  %1460 = vmatprep.subr.bf16.mxu1 %v1459_v40  ;;  %v209_v60 = vld [vmem:[#allocation6 + $0xb8] sm:$0xff]  ;;  %v335_v61 = vld [vmem:[#allocation6 + $0x4a8] sm:$0xff]  ;;  %v1593_v0 = vpack.c.bf16 %v332_v58, %v330_v56  ;;  %v206_v2 = vld [vmem:[#allocation6 + $0xa0] sm:$0xff] }
  0x5c   :  { %1588 = vmatprep.subr.bf16.mxu0 %v1587_v44  ;;  %v337_v62 = vld [vmem:[#allocation6 + $0x4b8] sm:$0xff]  ;;  %v1467_v1 = vpack.c.bf16 %v209_v60, %v207_v59  ;;  %v208_v3 = vld [vmem:[#allocation6 + $0xb0] sm:$0xff]  ;;  %v334_v4 = vld [vmem:[#allocation6 + $0x4a0] sm:$0xff] }
  0x5d   :  { %v1595_v5 = vpack.c.bf16 %v337_v62, %v335_v61  ;;  %v336_v6 = vld [vmem:[#allocation6 + $0x4b0] sm:$0xff]  ;;  %v211_v7 = vld [vmem:[#allocation6 + $0xc8] sm:$0xff]  ;;  %v213_v8 = vld [vmem:[#allocation6 + $0xd8] sm:$0xff]  ;;  %v1469_v11 = vpack.c.bf16 %v208_v3, %v206_v2 }
  0x5e   :  { %1462 = vmatpush1.bf16.msra.mxu1 %v1461_v51  ;;  %v339_v9 = vld [vmem:[#allocation6 + $0x4c8] sm:$0xff]  ;;  %v341_v10 = vld [vmem:[#allocation6 + $0x4d8] sm:$0xff]  ;;  %v1597_v12 = vpack.c.bf16 %v336_v6, %v334_v4  ;;  %v1471_v13 = vpack.c.bf16 %v213_v8, %v211_v7  ;;  %v210_v14 = vld [vmem:[#allocation6 + $0xc0] sm:$0xff] }
  0x5f   :  { %1590 = vmatpush1.bf16.msra.mxu0 %v1589_v52  ;;  %1464 = vmatprep.subr.bf16.mxu1 %v1463_v53  ;;  %v212_v15 = vld [vmem:[#allocation6 + $0xd0] sm:$0xff]  ;;  %v338_v16 = vld [vmem:[#allocation6 + $0x4c0] sm:$0xff]  ;;  %v1599_v17 = vpack.c.bf16 %v341_v10, %v339_v9  ;;  %v215_v19 = vld [vmem:[#allocation6 + $0xe8] sm:$0xff] }
  0x60   :  { %1592 = vmatprep.subr.bf16.mxu0 %v1591_v57  ;;  %v340_v18 = vld [vmem:[#allocation6 + $0x4d0] sm:$0xff]  ;;  %v217_v20 = vld [vmem:[#allocation6 + $0xf8] sm:$0xff]  ;;  %v343_v21 = vld [vmem:[#allocation6 + $0x4e8] sm:$0xff]  ;;  %v1473_v23 = vpack.c.bf16 %v212_v15, %v210_v14 }
  0x61   :  { %v345_v22 = vld [vmem:[#allocation6 + $0x4f8] sm:$0xff]  ;;  %v1601_v24 = vpack.c.bf16 %v340_v18, %v338_v16  ;;  %v1475_v25 = vpack.c.bf16 %v217_v20, %v215_v19  ;;  %v214_v26 = vld [vmem:[#allocation6 + $0xe0] sm:$0xff]  ;;  %v216_v27 = vld [vmem:[#allocation6 + $0xf0] sm:$0xff] }
  0x62   :  { %1466 = vmatpush1.bf16.msra.mxu1 %v1465_v63  ;;  %v342_v28 = vld [vmem:[#allocation6 + $0x4e0] sm:$0xff]  ;;  %v1603_v29 = vpack.c.bf16 %v345_v22, %v343_v21  ;;  %v344_v30 = vld [vmem:[#allocation6 + $0x4f0] sm:$0xff]  ;;  %v219_v31 = vld [vmem:[#allocation6 + $0x108] sm:$0xff]  ;;  %v1477_v35 = vpack.c.bf16 %v216_v27, %v214_v26 }
  0x63   :  { %1594 = vmatpush1.bf16.msra.mxu0 %v1593_v0  ;;  %1468 = vmatprep.subr.bf16.mxu1 %v1467_v1  ;;  %v221_v32 = vld [vmem:[#allocation6 + $0x118] sm:$0xff]  ;;  %v347_v33 = vld [vmem:[#allocation6 + $0x508] sm:$0xff]  ;;  %v1605_v36 = vpack.c.bf16 %v344_v30, %v342_v28  ;;  %v218_v38 = vld [vmem:[#allocation6 + $0x100] sm:$0xff] }
  0x64   :  { %1596 = vmatprep.subr.bf16.mxu0 %v1595_v5  ;;  %v349_v34 = vld [vmem:[#allocation6 + $0x518] sm:$0xff]  ;;  %v1479_v37 = vpack.c.bf16 %v221_v32, %v219_v31  ;;  %v220_v39 = vld [vmem:[#allocation6 + $0x110] sm:$0xff]  ;;  %v346_v40 = vld [vmem:[#allocation6 + $0x500] sm:$0xff] }
  0x65   :  { %v1607_v41 = vpack.c.bf16 %v349_v34, %v347_v33  ;;  %v348_v42 = vld [vmem:[#allocation6 + $0x510] sm:$0xff]  ;;  %v223_v43 = vld [vmem:[#allocation6 + $0x128] sm:$0xff]  ;;  %v225_v44 = vld [vmem:[#allocation6 + $0x138] sm:$0xff]  ;;  %v1481_v47 = vpack.c.bf16 %v220_v39, %v218_v38 }
  0x66   :  { %1470 = vmatpush1.bf16.msra.mxu1 %v1469_v11  ;;  %v351_v45 = vld [vmem:[#allocation6 + $0x528] sm:$0xff]  ;;  %v353_v46 = vld [vmem:[#allocation6 + $0x538] sm:$0xff]  ;;  %v1609_v48 = vpack.c.bf16 %v348_v42, %v346_v40  ;;  %v1483_v49 = vpack.c.bf16 %v225_v44, %v223_v43  ;;  %v222_v50 = vld [vmem:[#allocation6 + $0x120] sm:$0xff] }
  0x67   :  { %1598 = vmatpush1.bf16.msra.mxu0 %v1597_v12  ;;  %1472 = vmatprep.subr.bf16.mxu1 %v1471_v13  ;;  %v224_v51 = vld [vmem:[#allocation6 + $0x130] sm:$0xff]  ;;  %v350_v52 = vld [vmem:[#allocation6 + $0x520] sm:$0xff]  ;;  %v1611_v53 = vpack.c.bf16 %v353_v46, %v351_v45  ;;  %v227_v55 = vld [vmem:[#allocation6 + $0x148] sm:$0xff] }
  0x68   :  { %1600 = vmatprep.subr.bf16.mxu0 %v1599_v17  ;;  %v352_v54 = vld [vmem:[#allocation6 + $0x530] sm:$0xff]  ;;  %v229_v56 = vld [vmem:[#allocation6 + $0x158] sm:$0xff]  ;;  %v355_v57 = vld [vmem:[#allocation6 + $0x548] sm:$0xff]  ;;  %v1485_v59 = vpack.c.bf16 %v224_v51, %v222_v50 }
  0x69   :  { %v357_v58 = vld [vmem:[#allocation6 + $0x558] sm:$0xff]  ;;  %v1613_v60 = vpack.c.bf16 %v352_v54, %v350_v52  ;;  %v1487_v61 = vpack.c.bf16 %v229_v56, %v227_v55  ;;  %v226_v62 = vld [vmem:[#allocation6 + $0x140] sm:$0xff]  ;;  %v228_v63 = vld [vmem:[#allocation6 + $0x150] sm:$0xff] }
  0x6a   :  { %1474 = vmatpush1.bf16.msra.mxu1 %v1473_v23  ;;  %v354_v0 = vld [vmem:[#allocation6 + $0x540] sm:$0xff]  ;;  %v1615_v1 = vpack.c.bf16 %v357_v58, %v355_v57  ;;  %v356_v2 = vld [vmem:[#allocation6 + $0x550] sm:$0xff]  ;;  %v231_v3 = vld [vmem:[#allocation6 + $0x168] sm:$0xff]  ;;  %v1489_v7 = vpack.c.bf16 %v228_v63, %v226_v62 }
  0x6b   :  { %1602 = vmatpush1.bf16.msra.mxu0 %v1601_v24  ;;  %1476 = vmatprep.subr.bf16.mxu1 %v1475_v25  ;;  %v233_v4 = vld [vmem:[#allocation6 + $0x178] sm:$0xff]  ;;  %v359_v5 = vld [vmem:[#allocation6 + $0x568] sm:$0xff]  ;;  %v230_v8 = vld [vmem:[#allocation6 + $0x160] sm:$0xff]  ;;  %v1617_v9 = vpack.c.bf16 %v356_v2, %v354_v0 }
  0x6c   :  { %1604 = vmatprep.subr.bf16.mxu0 %v1603_v29  ;;  %v361_v6 = vld [vmem:[#allocation6 + $0x578] sm:$0xff]  ;;  %v1491_v10 = vpack.c.bf16 %v233_v4, %v231_v3  ;;  %v232_v11 = vld [vmem:[#allocation6 + $0x170] sm:$0xff]  ;;  %v358_v12 = vld [vmem:[#allocation6 + $0x560] sm:$0xff] }
  0x6d   :  { %v360_v13 = vld [vmem:[#allocation6 + $0x570] sm:$0xff]  ;;  %v1619_v14 = vpack.c.bf16 %v361_v6, %v359_v5  ;;  %v235_v15 = vld [vmem:[#allocation6 + $0x188] sm:$0xff]  ;;  %v237_v16 = vld [vmem:[#allocation6 + $0x198] sm:$0xff]  ;;  %v1493_v21 = vpack.c.bf16 %v232_v11, %v230_v8 }
  0x6e   :  { %1478 = vmatpush1.bf16.msra.mxu1 %v1477_v35  ;;  %v75_v17 = vld [vmem:[#allocation3 + $0x8] sm:$0xff]  ;;  %v365_v19 = vld [vmem:[#allocation6 + $0x598] sm:$0xff]  ;;  %v1621_v22 = vpack.c.bf16 %v360_v13, %v358_v12  ;;  %v1495_v23 = vpack.c.bf16 %v237_v16, %v235_v15  ;;  %v234_v24 = vld [vmem:[#allocation6 + $0x180] sm:$0xff] }
  0x6f   :  { %1606 = vmatpush1.bf16.msra.mxu0 %v1605_v36  ;;  %1480 = vmatprep.subr.bf16.mxu1 %v1479_v37  ;;  %v363_v18 = vld [vmem:[#allocation6 + $0x588] sm:$0xff]  ;;  %v236_v25 = vld [vmem:[#allocation6 + $0x190] sm:$0xff]  ;;  %v362_v26 = vld [vmem:[#allocation6 + $0x580] sm:$0xff] }
  0x70   :  { %1608 = vmatprep.subr.bf16.mxu0 %v1607_v41  ;;  %507 = vmatprep.mubr.f32.mxu1 %v75_v17  ;;  %v79_v20 = vld [vmem:[#allocation3 + $0x28] sm:$0xff]  ;;  %v1623_v27 = vpack.c.bf16 %v365_v19, %v363_v18  ;;  %v364_v28 = vld [vmem:[#allocation6 + $0x590] sm:$0xff]  ;;  %v241_v30 = vld [vmem:[#allocation6 + $0x1b8] sm:$0xff]  ;;  %v1497_v33 = vpack.c.bf16 %v236_v25, %v234_v24 }
  0x71   :  { %829 = vmatprep.mubr.f32.mxu0 %v79_v20  ;;  %v239_v29 = vld [vmem:[#allocation6 + $0x1a8] sm:$0xff]  ;;  %v369_v32 = vld [vmem:[#allocation6 + $0x5b8] sm:$0xff]  ;;  %v1625_v34 = vpack.c.bf16 %v364_v28, %v362_v26  ;;  %v238_v36 = vld [vmem:[#allocation6 + $0x1a0] sm:$0xff] }
  0x72   :  { %1482 = vmatpush1.bf16.msra.mxu1 %v1481_v47  ;;  %v367_v31 = vld [vmem:[#allocation6 + $0x5a8] sm:$0xff]  ;;  %v1499_v35 = vpack.c.bf16 %v241_v30, %v239_v29  ;;  %v240_v37 = vld [vmem:[#allocation6 + $0x1b0] sm:$0xff]  ;;  %v366_v38 = vld [vmem:[#allocation6 + $0x5a0] sm:$0xff] }
  0x73   :  { %1610 = vmatpush1.bf16.msra.mxu0 %v1609_v48  ;;  %1484 = vmatprep.subr.bf16.mxu1 %v1483_v49  ;;  %v1627_v39 = vpack.c.bf16 %v369_v32, %v367_v31  ;;  %v368_v40 = vld [vmem:[#allocation6 + $0x5b0] sm:$0xff]  ;;  %v243_v41 = vld [vmem:[#allocation6 + $0x1c8] sm:$0xff]  ;;  %v245_v42 = vld [vmem:[#allocation6 + $0x1d8] sm:$0xff]  ;;  %v1501_v45 = vpack.c.bf16 %v240_v37, %v238_v36 }
  0x74   :  { %1612 = vmatprep.subr.bf16.mxu0 %v1611_v53  ;;  %v371_v43 = vld [vmem:[#allocation6 + $0x5c8] sm:$0xff]  ;;  %v373_v44 = vld [vmem:[#allocation6 + $0x5d8] sm:$0xff]  ;;  %v1629_v46 = vpack.c.bf16 %v368_v40, %v366_v38  ;;  %v1503_v47 = vpack.c.bf16 %v245_v42, %v243_v41  ;;  %v242_v48 = vld [vmem:[#allocation6 + $0x1c0] sm:$0xff] }
  0x75   :  { %v244_v49 = vld [vmem:[#allocation6 + $0x1d0] sm:$0xff]  ;;  %v370_v50 = vld [vmem:[#allocation6 + $0x5c0] sm:$0xff]  ;;  %v1631_v51 = vpack.c.bf16 %v373_v44, %v371_v43  ;;  %v247_v53 = vld [vmem:[#allocation6 + $0x1e8] sm:$0xff] }
  0x76   :  { %1486 = vmatpush1.bf16.msra.mxu1 %v1485_v59  ;;  %v372_v52 = vld [vmem:[#allocation6 + $0x5d0] sm:$0xff]  ;;  %v249_v54 = vld [vmem:[#allocation6 + $0x1f8] sm:$0xff]  ;;  %v375_v55 = vld [vmem:[#allocation6 + $0x5e8] sm:$0xff]  ;;  %v1505_v57 = vpack.c.bf16 %v244_v49, %v242_v48 }
  0x77   :  { %1614 = vmatpush1.bf16.msra.mxu0 %v1613_v60  ;;  %1488 = vmatprep.subr.bf16.mxu1 %v1487_v61  ;;  %v377_v56 = vld [vmem:[#allocation6 + $0x5f8] sm:$0xff]  ;;  %v1633_v58 = vpack.c.bf16 %v372_v52, %v370_v50  ;;  %v1507_v59 = vpack.c.bf16 %v249_v54, %v247_v53  ;;  %v246_v60 = vld [vmem:[#allocation6 + $0x1e0] sm:$0xff]  ;;  %v248_v61 = vld [vmem:[#allocation6 + $0x1f0] sm:$0xff] }
  0x78   :  { %1616 = vmatprep.subr.bf16.mxu0 %v1615_v1  ;;  %v374_v62 = vld [vmem:[#allocation6 + $0x5e0] sm:$0xff]  ;;  %v1635_v63 = vpack.c.bf16 %v377_v56, %v375_v55  ;;  %v376_v0 = vld [vmem:[#allocation6 + $0x5f0] sm:$0xff]  ;;  %v251_v1 = vld [vmem:[#allocation6 + $0x208] sm:$0xff]  ;;  %v1509_v5 = vpack.c.bf16 %v248_v61, %v246_v60 }
  0x79   :  { %v253_v2 = vld [vmem:[#allocation6 + $0x218] sm:$0xff]  ;;  %v379_v3 = vld [vmem:[#allocation6 + $0x608] sm:$0xff]  ;;  %v1637_v6 = vpack.c.bf16 %v376_v0, %v374_v62  ;;  %v250_v8 = vld [vmem:[#allocation6 + $0x200] sm:$0xff] }
  0x7a   :  { %1490 = vmatpush1.bf16.msra.mxu1 %v1489_v7  ;;  %v381_v4 = vld [vmem:[#allocation6 + $0x618] sm:$0xff]  ;;  %v1511_v7 = vpack.c.bf16 %v253_v2, %v251_v1  ;;  %v378_v11 = vld [vmem:[#allocation6 + $0x600] sm:$0xff]  ;;  %v380_v12 = vld [vmem:[#allocation6 + $0x610] sm:$0xff] }
  0x7b   :  { %1618 = vmatpush1.bf16.msra.mxu0 %v1617_v9  ;;  %1492 = vmatprep.subr.bf16.mxu1 %v1491_v10  ;;  %v252_v9 = vld [vmem:[#allocation6 + $0x210] sm:$0xff]  ;;  %v1639_v10 = vpack.c.bf16 %v381_v4, %v379_v3  ;;  %v255_v13 = vld [vmem:[#allocation6 + $0x228] sm:$0xff]  ;;  %v74_v15 = vld [vmem:[#allocation3] sm:$0xff] }
  0x7c   :  { %1620 = vmatprep.subr.bf16.mxu0 %v1619_v14  ;;  %v257_v14 = vld [vmem:[#allocation6 + $0x238] sm:$0xff]  ;;  %v1513_v16 = vpack.c.bf16 %v252_v9, %v250_v8  ;;  %v78_v17 = vld [vmem:[#allocation3 + $0x20] sm:$0xff]  ;;  %v256_v19 = vld [vmem:[#allocation6 + $0x230] sm:$0xff] }
  0x7d   :  { %v254_v18 = vld [vmem:[#allocation6 + $0x220] sm:$0xff]  ;;  %v259_v24 = vld [vmem:[#allocation6 + $0x248] sm:$0xff]  ;;  %v261_v25 = vld [vmem:[#allocation6 + $0x258] sm:$0xff] }
  0x7e   :  { %1494 = vmatpush1.bf16.msra.mxu1 %v1493_v21  ;;  %v82_v20 = vld [vmem:[#allocation3 + $0x40] sm:$0xff]  ;;  %v81_v26 = vld [vmem:[#allocation3 + $0x38] sm:$0xff]  ;;  %v260_v30 = vld [vmem:[#allocation6 + $0x250] sm:$0xff] }
  0x7f   :  { %1622 = vmatpush1.bf16.msra.mxu0 %v1621_v22  ;;  %1496 = vmatprep.subr.bf16.mxu1 %v1495_v23  ;;  %v86_v21 = vld [vmem:[#allocation3 + $0x60] sm:$0xff]  ;;  %v1641_v22 = vpack.c.bf16 %v380_v12, %v378_v11  ;;  %v1515_v23 = vpack.c.bf16 %v257_v14, %v255_v13  ;;  %v85_v28 = vld [vmem:[#allocation3 + $0x58] sm:$0xff]  ;;  %v88_v36 = vld [vmem:[#allocation3 + $0x70] sm:$0xff] }
  0x80   :  { %1624 = vmatprep.subr.bf16.mxu0 %v1623_v27  ;;  %v1517_v27 = vpack.c.bf16 %v256_v19, %v254_v18  ;;  %v258_v29 = vld [vmem:[#allocation6 + $0x240] sm:$0xff]  ;;  %v89_v31 = vld [vmem:[#allocation3 + $0x78] sm:$0xff]  ;;  %v92_v38 = vld [vmem:[#allocation3 + $0x90] sm:$0xff] }
  0x81   :  { %v93_v32 = vld [vmem:[#allocation3 + $0x98] sm:$0xff]  ;;  %v1521_v37 = vpack.c.bf16 %v260_v30, %v258_v29  ;;  %v264_v40 = vld [vmem:[#allocation6 + $0x270] sm:$0xff]  ;;  %v267_v44 = vld [vmem:[#allocation6 + $0x288] sm:$0xff] }
  0x82   :  { %1498 = vmatpush1.bf16.msra.mxu1 %v1497_v33  ;;  %v1519_v33 = vpack.c.bf16 %v261_v25, %v259_v24  ;;  %v96_v41 = vld [vmem:[#allocation3 + $0xb0] sm:$0xff]  ;;  %v99_v48 = vld [vmem:[#allocation3 + $0xc8] sm:$0xff]  ;;  %v266_v49 = vld [vmem:[#allocation6 + $0x280] sm:$0xff] }
  0x83   :  { %1626 = vmatpush1.bf16.msra.mxu0 %v1625_v34  ;;  %1500 = vmatprep.subr.bf16.mxu1 %v1499_v35  ;;  %v263_v34 = vld [vmem:[#allocation6 + $0x268] sm:$0xff]  ;;  %v265_v35 = vld [vmem:[#allocation6 + $0x278] sm:$0xff]  ;;  %v100_v42 = vld [vmem:[#allocation3 + $0xd0] sm:$0xff] }
  0x84   :  { %1628 = vmatprep.subr.bf16.mxu0 %v1627_v39  ;;  %v262_v39 = vld [vmem:[#allocation6 + $0x260] sm:$0xff]  ;;  %v1523_v43 = vpack.c.bf16 %v265_v35, %v263_v34  ;;  %v268_v50 = vld [vmem:[#allocation6 + $0x290] sm:$0xff]  ;;  %v107_v52 = vld [vmem:[#allocation3 + $0x108] sm:$0xff] }
  0x85   :  { %v271_v54 = vld [vmem:[#allocation6 + $0x2a8] sm:$0xff]  ;;  %v273_v55 = vld [vmem:[#allocation6 + $0x2b8] sm:$0xff]  ;;  %v102_v56 = vld [vmem:[#allocation3 + $0xe0] sm:$0xff] }
  0x86   :  { %1502 = vmatpush1.bf16.msra.mxu1 %v1501_v45  ;;  %v269_v45 = vld [vmem:[#allocation6 + $0x298] sm:$0xff]  ;;  %v272_v60 = vld [vmem:[#allocation6 + $0x2b0] sm:$0xff]  ;;  %v110_v61 = vld [vmem:[#allocation3 + $0x120] sm:$0xff] }
  0x87   :  { %1630 = vmatpush1.bf16.msra.mxu0 %v1629_v46  ;;  %1504 = vmatprep.subr.bf16.mxu1 %v1503_v47  ;;  %v95_v46 = vld [vmem:[#allocation3 + $0xa8] sm:$0xff]  ;;  %v1525_v47 = vpack.c.bf16 %v264_v40, %v262_v39  ;;  %v1527_v53 = vpack.c.bf16 %v269_v45, %v267_v44  ;;  %v114_v62 = vld [vmem:[#allocation3 + $0x140] sm:$0xff]  ;;  %v277_v1 = vld [vmem:[#allocation6 + $0x2d8] sm:$0xff] }
  0x88   :  { %1632 = vmatprep.subr.bf16.mxu0 %v1631_v51  ;;  %v103_v51 = vld [vmem:[#allocation3 + $0xe8] sm:$0xff]  ;;  %v109_v2 = vld [vmem:[#allocation3 + $0x118] sm:$0xff]  ;;  %v116_v12 = vld [vmem:[#allocation3 + $0x150] sm:$0xff] }
  0x89   :  { %v275_v0 = vld [vmem:[#allocation6 + $0x2c8] sm:$0xff]  ;;  %v113_v4 = vld [vmem:[#allocation3 + $0x138] sm:$0xff]  ;;  %v120_v14 = vld [vmem:[#allocation3 + $0x170] sm:$0xff] }
  0x8a   :  { %1506 = vmatpush1.bf16.msra.mxu1 %v1505_v57  ;;  %v1529_v57 = vpack.c.bf16 %v268_v50, %v266_v49  ;;  %v121_v8 = vld [vmem:[#allocation3 + $0x178] sm:$0xff]  ;;  %v1535_v9 = vpack.c.bf16 %v277_v1, %v275_v0  ;;  %v128_v18 = vld [vmem:[#allocation3 + $0x1b0] sm:$0xff]  ;;  %v127_v24 = vld [vmem:[#allocation3 + $0x1a8] sm:$0xff] }
  0x8b   :  { %1634 = vmatpush1.bf16.msra.mxu0 %v1633_v58  ;;  %1508 = vmatprep.subr.bf16.mxu1 %v1507_v59  ;;  %v106_v58 = vld [vmem:[#allocation3 + $0x100] sm:$0xff]  ;;  %v281_v11 = vld [vmem:[#allocation6 + $0x2f8] sm:$0xff]  ;;  %v287_v30 = vld [vmem:[#allocation6 + $0x328] sm:$0xff] }
  0x8c   :  { %1636 = vmatprep.subr.bf16.mxu0 %v1635_v63  ;;  %v270_v59 = vld [vmem:[#allocation6 + $0x2a0] sm:$0xff]  ;;  %v1531_v63 = vpack.c.bf16 %v273_v55, %v271_v54  ;;  %v291_v40 = vld [vmem:[#allocation6 + $0x348] sm:$0xff]  ;;  %v141_v44 = vld [vmem:[#allocation3 + $0x218] sm:$0xff] }
  0x8d   :  { %v1533_v3 = vpack.c.bf16 %v272_v60, %v270_v59  ;;  %v282_v25 = vld [vmem:[#allocation6 + $0x300] sm:$0xff]  ;;  %v295_v50 = vld [vmem:[#allocation6 + $0x368] sm:$0xff]  ;;  %v148_v54 = vld [vmem:[#allocation3 + $0x250] sm:$0xff] }
  0x8e   :  { %1510 = vmatpush1.bf16.msra.mxu1 %v1509_v5  ;;  %v274_v5 = vld [vmem:[#allocation6 + $0x2c0] sm:$0xff]  ;;  %v299_v60 = vld [vmem:[#allocation6 + $0x388] sm:$0xff] }
  0x8f   :  { %1638 = vmatpush1.bf16.msra.mxu0 %v1637_v6  ;;  %1512 = vmatprep.subr.bf16.mxu1 %v1511_v7  ;;  %v276_v6 = vld [vmem:[#allocation6 + $0x2d0] sm:$0xff]  ;;  %v117_v7 = vld [vmem:[#allocation3 + $0x158] sm:$0xff]  ;;  %v134_v34 = vld [vmem:[#allocation3 + $0x1e0] sm:$0xff] }
  0x90   :  { %1640 = vmatprep.subr.bf16.mxu0 %v1639_v10  ;;  %v279_v10 = vld [vmem:[#allocation6 + $0x2e8] sm:$0xff]  ;;  %v1537_v13 = vpack.c.bf16 %v276_v6, %v274_v5  ;;  %v286_v35 = vld [vmem:[#allocation6 + $0x320] sm:$0xff] }
  0x91   :  { %508 = vmatmul.mubr.f32.vlgmr.msra.gmra.mrb[0].mxu1 %v74_v15  ;;  %v278_v15 = vld [vmem:[#allocation6 + $0x2e0] sm:$0xff]  ;;  %v1539_v19 = vpack.c.bf16 %v281_v11, %v279_v10  ;;  %v155_v0 = vld [vmem:[#allocation3 + $0x288] sm:$0xff] }
  0x92   :  { %830 = vmatmul.mubr.f32.vlgmr.msra.gmra.mrb[0].mxu0 %v78_v17  ;;  %1514 = vmatpush1.bf16.msra.mxu1 %v1513_v16  ;;  %v280_v16 = vld [vmem:[#allocation6 + $0x2f0] sm:$0xff]  ;;  %v290_v45 = vld [vmem:[#allocation6 + $0x340] sm:$0xff]  ;;  %v303_v6 = vld [vmem:[#allocation6 + $0x3a8] sm:$0xff] }
  0x93   :  { %513 = vmatprep.mubr.f32.mxu1 %v82_v20  ;;  %835 = vmatprep.mubr.f32.mxu0 %v86_v21  ;;  %v124_v17 = vld [vmem:[#allocation3 + $0x190] sm:$0xff]  ;;  %v283_v20 = vld [vmem:[#allocation6 + $0x308] sm:$0xff]  ;;  %v285_v21 = vld [vmem:[#allocation6 + $0x318] sm:$0xff] }
  0x94   :  { %1642 = vmatpush1.bf16.msra.mxu0 %v1641_v22  ;;  %1516 = vmatprep.subr.bf16.mxu1 %v1515_v23  ;;  %v123_v22 = vld [vmem:[#allocation3 + $0x188] sm:$0xff]  ;;  %v1541_v23 = vpack.c.bf16 %v280_v16, %v278_v15  ;;  %v1543_v29 = vpack.c.bf16 %v285_v21, %v283_v20  ;;  %v294_v55 = vld [vmem:[#allocation6 + $0x360] sm:$0xff]  ;;  %v169_v20 = vld [vmem:[#allocation3 + $0x2f8] sm:$0xff] }
  0x95   :  { %514 = vmatmul.mubr.f32.gmra.mrb[2].mxu1 %v81_v26  ;;  %v284_v26 = vld [vmem:[#allocation6 + $0x310] sm:$0xff]  ;;  %v298_v1 = vld [vmem:[#allocation6 + $0x380] sm:$0xff]  ;;  %v307_v16 = vld [vmem:[#allocation6 + $0x3c8] sm:$0xff] }
  0x96   :  { %836 = vmatmul.mubr.f32.gmra.mrb[2].mxu0 %v85_v28  ;;  %1518 = vmatpush1.bf16.msra.mxu1 %v1517_v27  ;;  %v131_v27 = vld [vmem:[#allocation3 + $0x1c8] sm:$0xff]  ;;  %v162_v10 = vld [vmem:[#allocation3 + $0x2c0] sm:$0xff] }
  0x97   :  { %519 = vmatprep.mubr.f32.mxu1 %v89_v31  ;;  %841 = vmatprep.mubr.f32.mxu0 %v93_v32  ;;  %v135_v28 = vld [vmem:[#allocation3 + $0x1e8] sm:$0xff]  ;;  %v289_v31 = vld [vmem:[#allocation6 + $0x338] sm:$0xff]  ;;  %v130_v32 = vld [vmem:[#allocation3 + $0x1c0] sm:$0xff] }
  0x98   :  { %1520 = vmatprep.subr.bf16.mxu1 %v1519_v33  ;;  %v1545_v33 = vpack.c.bf16 %v284_v26, %v282_v25  ;;  %v1547_v39 = vpack.c.bf16 %v289_v31, %v287_v30  ;;  %v302_v11 = vld [vmem:[#allocation6 + $0x3a0] sm:$0xff]  ;;  %v311_v26 = vld [vmem:[#allocation6 + $0x3e8] sm:$0xff]  ;;  %v176_v30 = vld [vmem:[#allocation3 + $0x330] sm:$0xff] }
  0x99   :  { %520 = vmatmul.mubr.f32.gmra.mrb[4].mxu1 %v88_v36  ;;  %v288_v36 = vld [vmem:[#allocation6 + $0x330] sm:$0xff]  ;;  %v306_v21 = vld [vmem:[#allocation6 + $0x3c0] sm:$0xff] }
  0x9a   :  { %842 = vmatmul.mubr.f32.gmra.mrb[4].mxu0 %v92_v38  ;;  %1522 = vmatpush1.bf16.msra.mxu1 %v1521_v37  ;;  %v138_v37 = vld [vmem:[#allocation3 + $0x200] sm:$0xff] }
  0x9b   :  { %525 = vmatprep.mubr.f32.mxu1 %v96_v41  ;;  %847 = vmatprep.mubr.f32.mxu0 %v100_v42  ;;  %v142_v38 = vld [vmem:[#allocation3 + $0x220] sm:$0xff]  ;;  %v293_v41 = vld [vmem:[#allocation6 + $0x358] sm:$0xff] }
  0x9c   :  { %1524 = vmatprep.subr.bf16.mxu1 %v1523_v43  ;;  %v137_v42 = vld [vmem:[#allocation3 + $0x1f8] sm:$0xff]  ;;  %v1549_v43 = vpack.c.bf16 %v288_v36, %v286_v35  ;;  %v1551_v49 = vpack.c.bf16 %v293_v41, %v291_v40  ;;  %v310_v31 = vld [vmem:[#allocation6 + $0x3e0] sm:$0xff]  ;;  %v179_v36 = vld [vmem:[#allocation3 + $0x348] sm:$0xff]  ;;  %v2005_v41 = vmov 0.0  }
  0x9d   :  { %526 = vmatmul.mubr.f32.gmra.mrb[6].mxu1 %v95_v46  ;;  %v292_v46 = vld [vmem:[#allocation6 + $0x350] sm:$0xff] }
  0x9e   :  { %848 = vmatmul.mubr.f32.gmra.mrb[6].mxu0 %v99_v48  ;;  %1526 = vmatpush1.bf16.msra.mxu1 %v1525_v47  ;;  %v145_v47 = vld [vmem:[#allocation3 + $0x238] sm:$0xff]  ;;  %v76_v40 = vld [vmem:[#allocation3 + $0x10] sm:$0xff] }
  0x9f   :  { %531 = vmatprep.mubr.f32.mxu1 %v103_v51  ;;  %853 = vmatprep.mubr.f32.mxu0 %v107_v52  ;;  %v149_v48 = vld [vmem:[#allocation3 + $0x258] sm:$0xff]  ;;  %v144_v52 = vld [vmem:[#allocation3 + $0x230] sm:$0xff] }
  0xa0   :  { %1528 = vmatprep.subr.bf16.mxu1 %v1527_v53  ;;  %v297_v51 = vld [vmem:[#allocation6 + $0x378] sm:$0xff]  ;;  %v1553_v53 = vpack.c.bf16 %v292_v46, %v290_v45  ;;  %v87_v45 = vld [vmem:[#allocation3 + $0x68] sm:$0xff] }
  0xa1   :  { %532 = vmatmul.mubr.f32.gmra.mrb[8].mxu1 %v102_v56  ;;  %v296_v56 = vld [vmem:[#allocation6 + $0x370] sm:$0xff]  ;;  %v1555_v59 = vpack.c.bf16 %v297_v51, %v295_v50  ;;  %v91_v46 = vld [vmem:[#allocation3 + $0x88] sm:$0xff]  ;;  %v97_v50 = vld [vmem:[#allocation3 + $0xb8] sm:$0xff] }
  0xa2   :  { %854 = vmatmul.mubr.f32.gmra.mrb[8].mxu0 %v106_v58  ;;  %1530 = vmatpush1.bf16.msra.mxu1 %v1529_v57  ;;  %v152_v57 = vld [vmem:[#allocation3 + $0x270] sm:$0xff]  ;;  %v101_v51 = vld [vmem:[#allocation3 + $0xd8] sm:$0xff] }
  0xa3   :  { %537 = vmatprep.mubr.f32.mxu1 %v110_v61  ;;  %859 = vmatprep.mubr.f32.mxu0 %v114_v62  ;;  %v156_v58 = vld [vmem:[#allocation3 + $0x290] sm:$0xff]  ;;  %v301_v61 = vld [vmem:[#allocation6 + $0x398] sm:$0xff]  ;;  %v151_v62 = vld [vmem:[#allocation3 + $0x268] sm:$0xff] }
  0xa4   :  { %1532 = vmatprep.subr.bf16.mxu1 %v1531_v63  ;;  %v1557_v63 = vpack.c.bf16 %v296_v56, %v294_v55  ;;  %v1559_v5 = vpack.c.bf16 %v301_v61, %v299_v60  ;;  %v112_v55 = vld [vmem:[#allocation3 + $0x130] sm:$0xff]  ;;  %v111_v56 = vld [vmem:[#allocation3 + $0x128] sm:$0xff]  ;;  %v122_v60 = vld [vmem:[#allocation3 + $0x180] sm:$0xff] }
  0xa5   :  { %538 = vmatmul.mubr.f32.gmra.mrb[10].mxu1 %v109_v2  ;;  %v300_v2 = vld [vmem:[#allocation6 + $0x390] sm:$0xff]  ;;  %v126_v61 = vld [vmem:[#allocation3 + $0x1a0] sm:$0xff] }
  0xa6   :  { %860 = vmatmul.mubr.f32.gmra.mrb[10].mxu0 %v113_v4  ;;  %1534 = vmatpush1.bf16.msra.mxu1 %v1533_v3  ;;  %v159_v3 = vld [vmem:[#allocation3 + $0x2a8] sm:$0xff] }
  0xa7   :  { %543 = vmatprep.mubr.f32.mxu1 %v117_v7  ;;  %865 = vmatprep.mubr.f32.mxu0 %v121_v8  ;;  %v163_v4 = vld [vmem:[#allocation3 + $0x2c8] sm:$0xff]  ;;  %v305_v7 = vld [vmem:[#allocation6 + $0x3b8] sm:$0xff]  ;;  %v158_v8 = vld [vmem:[#allocation3 + $0x2a0] sm:$0xff] }
  0xa8   :  { %1536 = vmatprep.subr.bf16.mxu1 %v1535_v9  ;;  %v1561_v9 = vpack.c.bf16 %v300_v2, %v298_v1  ;;  %v1563_v15 = vpack.c.bf16 %v305_v7, %v303_v6  ;;  %v132_v1 = vld [vmem:[#allocation3 + $0x1d0] sm:$0xff]  ;;  %v147_v6 = vld [vmem:[#allocation3 + $0x248] sm:$0xff]  ;;  %v146_v7 = vld [vmem:[#allocation3 + $0x240] sm:$0xff] }
  0xa9   :  { %544 = vmatmul.mubr.f32.gmra.mrb[12].mxu1 %v116_v12  ;;  %v304_v12 = vld [vmem:[#allocation6 + $0x3b0] sm:$0xff] }
  0xaa   :  { %866 = vmatmul.mubr.f32.gmra.mrb[12].mxu0 %v120_v14  ;;  %1538 = vmatpush1.bf16.msra.mxu1 %v1537_v13  ;;  %v166_v13 = vld [vmem:[#allocation3 + $0x2e0] sm:$0xff]  ;;  %v136_v2 = vld [vmem:[#allocation3 + $0x1f0] sm:$0xff] }
  0xab   :  { %549 = vmatprep.mubr.f32.mxu1 %v124_v17  ;;  %871 = vmatprep.mubr.f32.mxu0 %v128_v18  ;;  %v170_v14 = vld [vmem:[#allocation3 + $0x300] sm:$0xff]  ;;  %v309_v17 = vld [vmem:[#allocation6 + $0x3d8] sm:$0xff] }
  0xac   :  { %1540 = vmatprep.subr.bf16.mxu1 %v1539_v19  ;;  %v165_v18 = vld [vmem:[#allocation3 + $0x2d8] sm:$0xff]  ;;  %v1565_v19 = vpack.c.bf16 %v304_v12, %v302_v11  ;;  %v1567_v25 = vpack.c.bf16 %v309_v17, %v307_v16  ;;  %v167_v16 = vld [vmem:[#allocation3 + $0x2e8] sm:$0xff] }
  0xad   :  { %550 = vmatmul.mubr.f32.gmra.mrb[14].mxu1 %v123_v22  ;;  %v308_v22 = vld [vmem:[#allocation6 + $0x3d0] sm:$0xff]  ;;  %v157_v11 = vld [vmem:[#allocation3 + $0x298] sm:$0xff]  ;;  %v171_v17 = vld [vmem:[#allocation3 + $0x308] sm:$0xff] }
  0xae   :  { %872 = vmatmul.mubr.f32.gmra.mrb[14].mxu0 %v127_v24  ;;  %1542 = vmatpush1.bf16.msra.mxu1 %v1541_v23  ;;  %v173_v23 = vld [vmem:[#allocation3 + $0x318] sm:$0xff] }
  0xaf   :  { %555 = vmatprep.mubr.f32.mxu1 %v131_v27  ;;  %877 = vmatprep.mubr.f32.mxu0 %v135_v28  ;;  %v177_v24 = vld [vmem:[#allocation3 + $0x338] sm:$0xff]  ;;  %v172_v28 = vld [vmem:[#allocation3 + $0x310] sm:$0xff] }
  0xb0   :  { %1544 = vmatprep.subr.bf16.mxu1 %v1543_v29  ;;  %v313_v27 = vld [vmem:[#allocation6 + $0x3f8] sm:$0xff]  ;;  %v1569_v29 = vpack.c.bf16 %v308_v22, %v306_v21  ;;  %v182_v21 = vld [vmem:[#allocation3 + $0x360] sm:$0xff] }
  0xb1   :  { %556 = vmatmul.mubr.f32.gmra.mrb[16].mxu1 %v130_v32  ;;  %v312_v32 = vld [vmem:[#allocation6 + $0x3f0] sm:$0xff]  ;;  %v1571_v35 = vpack.c.bf16 %v313_v27, %v311_v26  ;;  %v161_v12 = vld [vmem:[#allocation3 + $0x2b8] sm:$0xff]  ;;  %v382_v27 = vld [vmem:[#allocation8] sm:$0x3] }
  0xb2   :  { %878 = vmatmul.mubr.f32.gmra.mrb[16].mxu0 %v134_v34  ;;  %1546 = vmatpush1.bf16.msra.mxu1 %v1545_v33  ;;  %v180_v33 = vld [vmem:[#allocation3 + $0x350] sm:$0xff]  ;;  %v181_v22 = vld [vmem:[#allocation3 + $0x358] sm:$0xff] }
  0xb3   :  { %561 = vmatprep.mubr.f32.mxu1 %v138_v37  ;;  %883 = vmatprep.mubr.f32.mxu0 %v142_v38  ;;  %v184_v34 = vld [vmem:[#allocation3 + $0x370] sm:$0xff]  ;;  %v1573_v37 = vpack.c.bf16 %v312_v32, %v310_v31  ;;  %v183_v38 = vld [vmem:[#allocation3 + $0x368] sm:$0xff] }
  0xb4   :  { %1548 = vmatprep.subr.bf16.mxu1 %v1547_v39  ;;  %v77_v39 = vld [vmem:[#allocation3 + $0x18] sm:$0xff] }
  0xb5   :  { %562 = vmatmul.mubr.f32.gmra.mrb[18].mxu1 %v137_v42  ;;  %v80_v42 = vld [vmem:[#allocation3 + $0x30] sm:$0xff] }
  0xb6   :  { %884 = vmatmul.mubr.f32.gmra.mrb[18].mxu0 %v141_v44  ;;  %1550 = vmatpush1.bf16.msra.mxu1 %v1549_v43  ;;  %v84_v43 = vld [vmem:[#allocation3 + $0x50] sm:$0xff]  ;;  %v83_v44 = vld [vmem:[#allocation3 + $0x48] sm:$0xff] }
  0xb7   :  { %567 = vmatprep.mubr.f32.mxu1 %v145_v47  ;;  %889 = vmatprep.mubr.f32.mxu0 %v149_v48  ;;  %v90_v47 = vld [vmem:[#allocation3 + $0x80] sm:$0xff] }
  0xb8   :  { %1552 = vmatprep.subr.bf16.mxu1 %v1551_v49  ;;  %v94_v48 = vld [vmem:[#allocation3 + $0xa0] sm:$0xff] }
  0xb9   :  { %568 = vmatmul.mubr.f32.gmra.mrb[20].mxu1 %v144_v52  ;;  %v98_v49 = vld [vmem:[#allocation3 + $0xc0] sm:$0xff]  ;;  %v105_v52 = vld [vmem:[#allocation3 + $0xf8] sm:$0xff] }
  0xba   :  { %890 = vmatmul.mubr.f32.gmra.mrb[20].mxu0 %v148_v54  ;;  %1554 = vmatpush1.bf16.msra.mxu1 %v1553_v53  ;;  %v104_v53 = vld [vmem:[#allocation3 + $0xf0] sm:$0xff] }
  0xbb   :  { %573 = vmatprep.mubr.f32.mxu1 %v152_v57  ;;  %895 = vmatprep.mubr.f32.mxu0 %v156_v58  ;;  %v108_v54 = vld [vmem:[#allocation3 + $0x110] sm:$0xff]  ;;  %v115_v57 = vld [vmem:[#allocation3 + $0x148] sm:$0xff] }
  0xbc   :  { %1556 = vmatprep.subr.bf16.mxu1 %v1555_v59  ;;  %v119_v58 = vld [vmem:[#allocation3 + $0x168] sm:$0xff]  ;;  %v118_v59 = vld [vmem:[#allocation3 + $0x160] sm:$0xff] }
  0xbd   :  { %574 = vmatmul.mubr.f32.gmra.mrb[22].mxu1 %v151_v62  ;;  %v125_v62 = vld [vmem:[#allocation3 + $0x198] sm:$0xff] }
  0xbe   :  { %896 = vmatmul.mubr.f32.gmra.mrb[22].mxu0 %v155_v0  ;;  %1558 = vmatpush1.bf16.msra.mxu1 %v1557_v63  ;;  %v129_v63 = vld [vmem:[#allocation3 + $0x1b8] sm:$0xff] }
  0xbf   :  { %579 = vmatprep.mubr.f32.mxu1 %v159_v3  ;;  %901 = vmatprep.mubr.f32.mxu0 %v163_v4  ;;  %v133_v0 = vld [vmem:[#allocation3 + $0x1d8] sm:$0xff]  ;;  %v140_v3 = vld [vmem:[#allocation3 + $0x210] sm:$0xff]  ;;  %v139_v4 = vld [vmem:[#allocation3 + $0x208] sm:$0xff] }
  0xc0   :  { %1560 = vmatprep.subr.bf16.mxu1 %v1559_v5  ;;  %v143_v5 = vld [vmem:[#allocation3 + $0x228] sm:$0xff] }
  0xc1   :  { %580 = vmatmul.mubr.f32.gmra.mrb[24].mxu1 %v158_v8  ;;  %v150_v8 = vld [vmem:[#allocation3 + $0x260] sm:$0xff] }
  0xc2   :  { %902 = vmatmul.mubr.f32.gmra.mrb[24].mxu0 %v162_v10  ;;  %1562 = vmatpush1.bf16.msra.mxu1 %v1561_v9  ;;  %v154_v9 = vld [vmem:[#allocation3 + $0x280] sm:$0xff]  ;;  %v153_v10 = vld [vmem:[#allocation3 + $0x278] sm:$0xff] }
  0xc3   :  { %585 = vmatprep.mubr.f32.mxu1 %v166_v13  ;;  %907 = vmatprep.mubr.f32.mxu0 %v170_v14  ;;  %v160_v13 = vld [vmem:[#allocation3 + $0x2b0] sm:$0xff] }
  0xc4   :  { %1564 = vmatprep.subr.bf16.mxu1 %v1563_v15  ;;  %v164_v14 = vld [vmem:[#allocation3 + $0x2d0] sm:$0xff] }
  0xc5   :  { %586 = vmatmul.mubr.f32.gmra.mrb[26].mxu1 %v165_v18  ;;  %v168_v15 = vld [vmem:[#allocation3 + $0x2f0] sm:$0xff]  ;;  %v175_v18 = vld [vmem:[#allocation3 + $0x328] sm:$0xff] }
  0xc6   :  { %908 = vmatmul.mubr.f32.gmra.mrb[26].mxu0 %v169_v20  ;;  %1566 = vmatpush1.bf16.msra.mxu1 %v1565_v19  ;;  %v174_v19 = vld [vmem:[#allocation3 + $0x320] sm:$0xff] }
  0xc7   :  { %591 = vmatprep.mubr.f32.mxu1 %v173_v23  ;;  %913 = vmatprep.mubr.f32.mxu0 %v177_v24  ;;  %v178_v20 = vld [vmem:[#allocation3 + $0x340] sm:$0xff]  ;;  %v185_v23 = vld [vmem:[#allocation3 + $0x378] sm:$0xff]  ;;  %v384_v24 = vlaneseq }
  0xc8   :  { %1568 = vmatprep.subr.bf16.mxu1 %v1567_v25 }
  0xc9   :  { %592 = vmatmul.mubr.f32.gmra.mrb[28].mxu1 %v172_v28  ;;  %v2122_v25 = vshrl.u32 %v384_v24, 7 }
  0xca   :  { %914 = vmatmul.mubr.f32.gmra.mrb[28].mxu0 %v176_v30  ;;  %1570 = vmatpush1.bf16.msra.mxu1 %v1569_v29 }
  0xcb   :  { %597 = vmatprep.mubr.f32.mxu1 %v180_v33  ;;  %919 = vmatprep.mubr.f32.mxu0 %v184_v34  ;;  %v386_v26 = vsub.s32 0, %v2122_v25  ;;  %v390_v28 = vsub.s32 1, %v2122_v25 }
  0xcc   :  { %1572 = vmatprep.subr.bf16.mxu1 %v1571_v35 }
  0xcd   :  { %598 = vmatmul.mubr.f32.gmra.mrb[30].mxu1 %v179_v36  ;;  %v2126_v29 = vrot.slane %v382_v27, %v386_v26  ;;  %v2130_v30 = vrot.slane %v382_v27, %v390_v28 }
  0xce   :  { %920 = vmatmul.mubr.f32.gmra.mrb[30].mxu0 %v183_v38  ;;  %1574 = vmatpush1.bf16.msra.mxu1 %v1573_v37 }
  0xcf   :  { %668 = vmatprep.mubr.f32.mxu1 %v77_v39  ;;  %990 = vmatprep.mubr.f32.mxu0 %v2005_v41 }
  0xd1   :  { %669 = vmatmul.mubr.f32.vlgmr.msra.gmra.mrb[0].mxu1 %v76_v40 }
  0xd2   :  { %1430 = vmatmul.mubr.msk.f32.vlgmr.msra.gmra.mrb[0].mxu0 %vm394_vm0, %v80_v42  ;;  %674 = vmatprep.mubr.f32.mxu1 %v84_v43 }
  0xd3   :  { %996 = vmatprep.mubr.f32.mxu0 %v2005_v41 }
  0xd5   :  { %675 = vmatmul.mubr.f32.gmra.mrb[2].mxu1 %v83_v44 }
  0xd6   :  { %1431 = vmatmul.mubr.msk.f32.gmra.mrb[2].mxu0 %vm394_vm0, %v87_v45  ;;  %680 = vmatprep.mubr.f32.mxu1 %v91_v46 }
  0xd7   :  { %1002 = vmatprep.mubr.f32.mxu0 %v2005_v41 }
  0xd9   :  { %681 = vmatmul.mubr.f32.gmra.mrb[4].mxu1 %v90_v47 }
  0xda   :  { %1432 = vmatmul.mubr.msk.f32.gmra.mrb[4].mxu0 %vm394_vm0, %v94_v48  ;;  %686 = vmatprep.mubr.f32.mxu1 %v98_v49 }
  0xdb   :  { %1008 = vmatprep.mubr.f32.mxu0 %v2005_v41 }
  0xdd   :  { %687 = vmatmul.mubr.f32.gmra.mrb[6].mxu1 %v97_v50 }
  0xde   :  { %1433 = vmatmul.mubr.msk.f32.gmra.mrb[6].mxu0 %vm394_vm0, %v101_v51  ;;  %692 = vmatprep.mubr.f32.mxu1 %v105_v52 }
  0xdf   :  { %1014 = vmatprep.mubr.f32.mxu0 %v2005_v41 }
  0xe1   :  { %693 = vmatmul.mubr.f32.gmra.mrb[8].mxu1 %v104_v53 }
  0xe2   :  { %1434 = vmatmul.mubr.msk.f32.gmra.mrb[8].mxu0 %vm394_vm0, %v108_v54  ;;  %698 = vmatprep.mubr.f32.mxu1 %v112_v55 }
  0xe3   :  { %1020 = vmatprep.mubr.f32.mxu0 %v2005_v41 }
  0xe5   :  { %699 = vmatmul.mubr.f32.gmra.mrb[10].mxu1 %v111_v56 }
  0xe6   :  { %1435 = vmatmul.mubr.msk.f32.gmra.mrb[10].mxu0 %vm394_vm0, %v115_v57  ;;  %704 = vmatprep.mubr.f32.mxu1 %v119_v58 }
  0xe7   :  { %1026 = vmatprep.mubr.f32.mxu0 %v2005_v41 }
  0xe9   :  { %705 = vmatmul.mubr.f32.gmra.mrb[12].mxu1 %v118_v59 }
  0xea   :  { %1436 = vmatmul.mubr.msk.f32.gmra.mrb[12].mxu0 %vm394_vm0, %v122_v60  ;;  %710 = vmatprep.mubr.f32.mxu1 %v126_v61 }
  0xeb   :  { %1032 = vmatprep.mubr.f32.mxu0 %v2005_v41 }
  0xed   :  { %711 = vmatmul.mubr.f32.gmra.mrb[14].mxu1 %v125_v62 }
  0xee   :  { %1437 = vmatmul.mubr.msk.f32.gmra.mrb[14].mxu0 %vm394_vm0, %v129_v63  ;;  %716 = vmatprep.mubr.f32.mxu1 %v133_v0 }
  0xef   :  { %1038 = vmatprep.mubr.f32.mxu0 %v2005_v41 }
  0xf1   :  { %717 = vmatmul.mubr.f32.gmra.mrb[16].mxu1 %v132_v1 }
  0xf2   :  { %1438 = vmatmul.mubr.msk.f32.gmra.mrb[16].mxu0 %vm394_vm0, %v136_v2  ;;  %722 = vmatprep.mubr.f32.mxu1 %v140_v3 }
  0xf3   :  { %1044 = vmatprep.mubr.f32.mxu0 %v2005_v41 }
  0xf5   :  { %723 = vmatmul.mubr.f32.gmra.mrb[18].mxu1 %v139_v4  ;;  %v1215_v4 = vld [vmem:[#allocation9] sm:$0x3] }
  0xf6   :  { %1439 = vmatmul.mubr.msk.f32.gmra.mrb[18].mxu0 %vm394_vm0, %v143_v5  ;;  %728 = vmatprep.mubr.f32.mxu1 %v147_v6 }
  0xf7   :  { %1050 = vmatprep.mubr.f32.mxu0 %v2005_v41 }
  0xf9   :  { %729 = vmatmul.mubr.f32.gmra.mrb[20].mxu1 %v146_v7 }
  0xfa   :  { %1440 = vmatmul.mubr.msk.f32.gmra.mrb[20].mxu0 %vm394_vm0, %v150_v8  ;;  %734 = vmatprep.mubr.f32.mxu1 %v154_v9 }
  0xfb   :  { %1056 = vmatprep.mubr.f32.mxu0 %v2005_v41 }
  0xfd   :  { %735 = vmatmul.mubr.f32.gmra.mrb[22].mxu1 %v153_v10 }
  0xfe   :  { %1441 = vmatmul.mubr.msk.f32.gmra.mrb[22].mxu0 %vm394_vm0, %v157_v11  ;;  %740 = vmatprep.mubr.f32.mxu1 %v161_v12 }
  0xff   :  { %1062 = vmatprep.mubr.f32.mxu0 %v2005_v41 }
 0x101   :  { %741 = vmatmul.mubr.f32.gmra.mrb[24].mxu1 %v160_v13 }
 0x102   :  { %1442 = vmatmul.mubr.msk.f32.gmra.mrb[24].mxu0 %vm394_vm0, %v164_v14  ;;  %746 = vmatprep.mubr.f32.mxu1 %v168_v15 }
 0x103   :  { %1068 = vmatprep.mubr.f32.mxu0 %v2005_v41 }
 0x105   :  { %747 = vmatmul.mubr.f32.gmra.mrb[26].mxu1 %v167_v16 }
 0x106   :  { %1443 = vmatmul.mubr.msk.f32.gmra.mrb[26].mxu0 %vm394_vm0, %v171_v17  ;;  %752 = vmatprep.mubr.f32.mxu1 %v175_v18  ;;  %v2142_v17 = vrot.slane %v1215_v4, %v386_v26 }
 0x107   :  { %1074 = vmatprep.mubr.f32.mxu0 %v2005_v41 }
 0x109   :  { %753 = vmatmul.mubr.f32.gmra.mrb[28].mxu1 %v174_v19 }
 0x10a   :  { %1444 = vmatmul.mubr.msk.f32.gmra.mrb[28].mxu0 %vm394_vm0, %v178_v20  ;;  %758 = vmatprep.mubr.f32.mxu1 %v182_v21  ;;  %v2146_v20 = vrot.slane %v1215_v4, %v390_v28 }
 0x10b   :  { %1080 = vmatprep.mubr.f32.mxu0 %v2005_v41 }
 0x10d   :  { %759 = vmatmul.mubr.f32.gmra.mrb[30].mxu1 %v181_v22 }
 0x10e   :  { %1445 = vmatmul.mubr.msk.f32.gmra.mrb[30].mxu0 %vm394_vm0, %v185_v23 }
 0x1a4   :  { %v670_v31 = vpop.f32.mrb[0].mxu1 }
 0x1a5   :  { %v1643_v32 = vadd.f32 %v670_v31, %v2126_v29  ;;  %v992_v33 = vpop.f32.mrb[0].mxu0  ;;  %v672_v34 = vpop.f32.mrb[1].mxu1 }
 0x1a6   :  { %v1645_v35 = vadd.f32 %v672_v34, %v2130_v30  ;;  %v994_v36 = vpop.f32.mrb[1].mxu0 }
 0x1a7   :  { %v1644_v37 = vadd.f32 %v1643_v32, %v992_v33 }
 0x1a8   :  { %v1646_v38 = vadd.f32 %v1645_v35, %v994_v36  ;;  %v676_v39 = vpop.f32.mrb[2].mxu1 }
 0x1a9   :  { %v1087_v40 = vmul.f32 0.5, %v1644_v37  ;;  %v1647_v41 = vadd.f32 %v676_v39, %v2126_v29  ;;  %v998_v42 = vpop.f32.mrb[2].mxu0  ;;  %v678_v43 = vpop.f32.mrb[3].mxu1 }
 0x1aa   :  { %v1088_v44 = vmul.f32 0.5, %v1646_v38  ;;  %v1649_v45 = vadd.f32 %v678_v43, %v2130_v30  ;;  %v1000_v46 = vpop.f32.mrb[3].mxu0 }
 0x1ab   :  { %1783 = vtanh.f32 %v1087_v40  ;;  %v1648_v47 = vadd.f32 %v1647_v41, %v998_v42 }
 0x1ac   :  { %1785 = vtanh.f32 %v1088_v44  ;;  %v1650_v48 = vadd.f32 %v1649_v45, %v1000_v46  ;;  %v682_v49 = vpop.f32.mrb[4].mxu1 }
 0x1ad   :  { %v1089_v50 = vmul.f32 0.5, %v1648_v47  ;;  %v1651_v51 = vadd.f32 %v682_v49, %v2126_v29  ;;  %v1004_v52 = vpop.f32.mrb[4].mxu0  ;;  %v684_v53 = vpop.f32.mrb[5].mxu1 }
 0x1ae   :  { %v1090_v54 = vmul.f32 0.5, %v1650_v48  ;;  %v1653_v55 = vadd.f32 %v684_v53, %v2130_v30  ;;  %v1006_v56 = vpop.f32.mrb[5].mxu0 }
 0x1af   :  { %1787 = vtanh.f32 %v1089_v50  ;;  %v1652_v57 = vadd.f32 %v1651_v51, %v1004_v52 }
 0x1b0   :  { %1789 = vtanh.f32 %v1090_v54  ;;  %v1654_v58 = vadd.f32 %v1653_v55, %v1006_v56  ;;  %v688_v59 = vpop.f32.mrb[6].mxu1 }
 0x1b1   :  { %v1091_v60 = vmul.f32 0.5, %v1652_v57  ;;  %v1655_v61 = vadd.f32 %v688_v59, %v2126_v29  ;;  %v1010_v62 = vpop.f32.mrb[6].mxu0  ;;  %v690_v63 = vpop.f32.mrb[7].mxu1 }
 0x1b2   :  { %v1092_v0 = vmul.f32 0.5, %v1654_v58  ;;  %v1657_v1 = vadd.f32 %v690_v63, %v2130_v30  ;;  %v1012_v2 = vpop.f32.mrb[7].mxu0 }
 0x1b3   :  { %1791 = vtanh.f32 %v1091_v60  ;;  %v1656_v3 = vadd.f32 %v1655_v61, %v1010_v62 }
 0x1b4   :  { %1793 = vtanh.f32 %v1092_v0  ;;  %v1658_v5 = vadd.f32 %v1657_v1, %v1012_v2  ;;  %v694_v6 = vpop.f32.mrb[8].mxu1 }
 0x1b5   :  { %v1784_v7 = vpop.eup %1783  ;;  %v1093_v8 = vmul.f32 0.5, %v1656_v3  ;;  %v1659_v9 = vadd.f32 %v694_v6, %v2126_v29  ;;  %v1016_v10 = vpop.f32.mrb[8].mxu0 }
 0x1b6   :  { %v696_v11 = vpop.f32.mrb[9].mxu1  ;;  %v1786_v12 = vpop.eup %1785  ;;  %v1151_v13 = vadd.f32 1.0, %v1784_v7  ;;  %v1094_v14 = vmul.f32 0.5, %v1658_v5 }
 0x1b7   :  { %v1661_v15 = vadd.f32 %v696_v11, %v2130_v30  ;;  %v1018_v16 = vpop.f32.mrb[9].mxu0  ;;  %v1152_v18 = vadd.f32 1.0, %v1786_v12  ;;  %1795 = vtanh.f32 %v1093_v8  ;;  %v1660_v19 = vadd.f32 %v1659_v9, %v1016_v10 }
 0x1b8   :  { %1797 = vtanh.f32 %v1094_v14  ;;  %v700_v22 = vpop.f32.mrb[10].mxu1  ;;  %v1183_v23 = vmul.f32 0.5, %v1151_v13 }
 0x1b9   :  { %v1662_v21 = vadd.f32 %v1661_v15, %v1018_v16  ;;  %v1788_v24 = vpop.eup %1787  ;;  %v1095_v27 = vmul.f32 0.5, %v1660_v19  ;;  %v1663_v31 = vadd.f32 %v700_v22, %v2126_v29  ;;  %v1022_v32 = vpop.f32.mrb[10].mxu0  ;;  %v1184_v34 = vmul.f32 0.5, %v1152_v18 }
 0x1ba   :  { %v702_v33 = vpop.f32.mrb[11].mxu1  ;;  %v1790_v26 = vpop.eup %1789  ;;  %v1153_v35 = vadd.f32 1.0, %v1788_v24  ;;  %v1227_v25 = vmul.f32 %v2142_v17, %v1183_v23 }
 0x1bb   :  { %v1096_v36 = vmul.f32 0.5, %v1662_v21  ;;  %v1665_v37 = vadd.f32 %v702_v33, %v2130_v30  ;;  %v1024_v38 = vpop.f32.mrb[11].mxu0  ;;  %v1154_v28 = vadd.f32 1.0, %v1790_v26  ;;  %1799 = vtanh.f32 %v1095_v27 }
 0x1bc   :  { %v1664_v39 = vadd.f32 %v1663_v31, %v1022_v32  ;;  %v1228_v40 = vmul.f32 %v2146_v20, %v1184_v34  ;;  %v1185_v41 = vmul.f32 0.5, %v1153_v35  ;;  %v706_v43 = vpop.f32.mrb[12].mxu1 }
 0x1bd   :  { %1801 = vtanh.f32 %v1096_v36  ;;  %v1666_v42 = vadd.f32 %v1665_v37, %v1024_v38  ;;  %v1792_v44 = vpop.eup %1791  ;;  %v1186_v45 = vmul.f32 0.5, %v1154_v28  ;;  %v1667_v47 = vadd.f32 %v706_v43, %v2126_v29  ;;  %v1028_v48 = vpop.f32.mrb[12].mxu0 }
 0x1be   :  { %v1097_v46 = vmul.f32 0.5, %v1664_v39  ;;  %v708_v49 = vpop.f32.mrb[13].mxu1  ;;  %v1259_v50 = vadd.f32 %v1228_v40, %v1227_v25  ;;  %v1794_v51 = vpop.eup %1793  ;;  %v1155_v52 = vadd.f32 1.0, %v1792_v44  ;;  %v1229_v56 = vmul.f32 %v2142_v17, %v1185_v41 }
 0x1bf   :  { %v1098_v53 = vmul.f32 0.5, %v1666_v42  ;;  %v1669_v54 = vadd.f32 %v708_v49, %v2130_v30  ;;  %v1030_v55 = vpop.f32.mrb[13].mxu0  ;;  %v1156_v57 = vadd.f32 1.0, %v1794_v51  ;;  %v1668_v58 = vadd.f32 %v1667_v47, %v1028_v48 }
 0x1c0   :  { %1803 = vtanh.f32 %v1097_v46  ;;  %1260 = vadd.xlane.f32.xlu0 %v1259_v50  ;;  %v1230_v59 = vmul.f32 %v2146_v20, %v1186_v45  ;;  %v712_v61 = vpop.f32.mrb[14].mxu1  ;;  %v1187_v62 = vmul.f32 0.5, %v1155_v52 }
 0x1c1   :  { %1805 = vtanh.f32 %v1098_v53  ;;  %v1670_v60 = vadd.f32 %v1669_v54, %v1030_v55  ;;  %v1796_v63 = vpop.eup %1795  ;;  %v1099_v0 = vmul.f32 0.5, %v1668_v58  ;;  %v1671_v1 = vadd.f32 %v712_v61, %v2126_v29  ;;  %v1034_v2 = vpop.f32.mrb[14].mxu0 }
 0x1c2   :  { %v714_v3 = vpop.f32.mrb[15].mxu1  ;;  %v1262_v4 = vadd.f32 %v1230_v59, %v1229_v56  ;;  %v1188_v5 = vmul.f32 0.5, %v1156_v57  ;;  %v1798_v6 = vpop.eup %1797  ;;  %v1157_v7 = vadd.f32 1.0, %v1796_v63  ;;  %v1231_v11 = vmul.f32 %v2142_v17, %v1187_v62 }
 0x1c3   :  { %v1100_v8 = vmul.f32 0.5, %v1670_v60  ;;  %v1673_v9 = vadd.f32 %v714_v3, %v2130_v30  ;;  %v1036_v10 = vpop.f32.mrb[15].mxu0  ;;  %v1158_v12 = vadd.f32 1.0, %v1798_v6  ;;  %1807 = vtanh.f32 %v1099_v0 }
 0x1c4   :  { %v1672_v13 = vadd.f32 %v1671_v1, %v1034_v2  ;;  %1263 = vadd.xlane.f32.xlu0 %v1262_v4  ;;  %v1232_v14 = vmul.f32 %v2146_v20, %v1188_v5  ;;  %v1189_v15 = vmul.f32 0.5, %v1157_v7  ;;  %v718_v18 = vpop.f32.mrb[16].mxu1 }
 0x1c5   :  { %1809 = vtanh.f32 %v1100_v8  ;;  %v1674_v16 = vadd.f32 %v1673_v9, %v1036_v10  ;;  %v1800_v19 = vpop.eup %1799  ;;  %v1190_v21 = vmul.f32 0.5, %v1158_v12  ;;  %v1675_v23 = vadd.f32 %v718_v18, %v2126_v29  ;;  %v1040_v24 = vpop.f32.mrb[16].mxu0 }
 0x1c6   :  { %v1101_v22 = vmul.f32 0.5, %v1672_v13  ;;  %v720_v27 = vpop.f32.mrb[17].mxu1  ;;  %v1265_v31 = vadd.f32 %v1232_v14, %v1231_v11  ;;  %v1159_v33 = vadd.f32 1.0, %v1800_v19  ;;  %v1042_v35 = vpop.f32.mrb[17].mxu0  ;;  %v1233_v36 = vmul.f32 %v2142_v17, %v1189_v15 }
 0x1c7   :  { %v1802_v32 = vpop.eup %1801  ;;  %v1102_v34 = vmul.f32 0.5, %v1674_v16  ;;  %v1677_v26 = vadd.f32 %v720_v27, %v2130_v30  ;;  %v1676_v38 = vadd.f32 %v1675_v23, %v1040_v24  ;;  %v1234_v25 = vmul.f32 %v2146_v20, %v1190_v21 }
 0x1c8   :  { %v1160_v37 = vadd.f32 1.0, %v1802_v32  ;;  %1811 = vtanh.f32 %v1101_v22  ;;  %1266 = vadd.xlane.f32.xlu1 %v1265_v31  ;;  %v1191_v28 = vmul.f32 0.5, %v1159_v33  ;;  %v724_v40 = vpop.f32.mrb[18].mxu1 }
 0x1c9   :  { %1813 = vtanh.f32 %v1102_v34  ;;  %v1678_v39 = vadd.f32 %v1677_v26, %v1042_v35  ;;  %v1103_v43 = vmul.f32 0.5, %v1676_v38  ;;  %v1679_v44 = vadd.f32 %v724_v40, %v2126_v29  ;;  %v1046_v45 = vpop.f32.mrb[18].mxu0  ;;  %v726_v46 = vpop.f32.mrb[19].mxu1 }
 0x1ca   :  { %v1804_v41 = vpop.eup %1803  ;;  %v1192_v42 = vmul.f32 0.5, %v1160_v37  ;;  %v1268_v47 = vadd.f32 %v1234_v25, %v1233_v36  ;;  %v1681_v51 = vadd.f32 %v726_v46, %v2130_v30  ;;  %v1048_v52 = vpop.f32.mrb[19].mxu0  ;;  %v1235_v53 = vmul.f32 %v2142_v17, %v1191_v28 }
 0x1cb   :  { %v1806_v48 = vpop.eup %1805  ;;  %v1161_v49 = vadd.f32 1.0, %v1804_v41  ;;  %v1104_v50 = vmul.f32 0.5, %v1678_v39  ;;  %1815 = vtanh.f32 %v1103_v43  ;;  %v1680_v55 = vadd.f32 %v1679_v44, %v1046_v45 }
 0x1cc   :  { %v1162_v54 = vadd.f32 1.0, %v1806_v48  ;;  %1269 = vadd.xlane.f32.xlu1 %v1268_v47  ;;  %v1236_v56 = vmul.f32 %v2146_v20, %v1192_v42  ;;  %v1682_v58 = vadd.f32 %v1681_v51, %v1048_v52  ;;  %v730_v59 = vpop.f32.mrb[20].mxu1 }
 0x1cd   :  { %v1193_v57 = vmul.f32 0.5, %v1161_v49  ;;  %1817 = vtanh.f32 %v1104_v50  ;;  %v1808_v60 = vpop.eup %1807  ;;  %v1105_v62 = vmul.f32 0.5, %v1680_v55  ;;  %v1683_v63 = vadd.f32 %v730_v59, %v2126_v29  ;;  %v1052_v0 = vpop.f32.mrb[20].mxu0 }
 0x1ce   :  { %v1194_v61 = vmul.f32 0.5, %v1162_v54  ;;  %v732_v1 = vpop.f32.mrb[21].mxu1  ;;  %v1271_v2 = vadd.f32 %v1236_v56, %v1235_v53  ;;  %v1163_v4 = vadd.f32 1.0, %v1808_v60  ;;  %v1106_v5 = vmul.f32 0.5, %v1682_v58  ;;  %v1054_v7 = vpop.f32.mrb[21].mxu0 }
 0x1cf   :  { %v1810_v3 = vpop.eup %1809  ;;  %v1685_v6 = vadd.f32 %v732_v1, %v2130_v30  ;;  %v1237_v8 = vmul.f32 %v2142_v17, %v1193_v57  ;;  %1819 = vtanh.f32 %v1105_v62  ;;  %v1684_v10 = vadd.f32 %v1683_v63, %v1052_v0 }
 0x1d0   :  { %v1164_v9 = vadd.f32 1.0, %v1810_v3  ;;  %1272 = vadd.xlane.f32.xlu0 %v1271_v2  ;;  %v1238_v11 = vmul.f32 %v2146_v20, %v1194_v61  ;;  %v1195_v12 = vmul.f32 0.5, %v1163_v4  ;;  %1821 = vtanh.f32 %v1106_v5  ;;  %v736_v14 = vpop.f32.mrb[22].mxu1 }
 0x1d1   :  { %v1686_v13 = vadd.f32 %v1685_v6, %v1054_v7  ;;  %v1107_v18 = vmul.f32 0.5, %v1684_v10  ;;  %v1687_v19 = vadd.f32 %v736_v14, %v2126_v29  ;;  %v1058_v21 = vpop.f32.mrb[22].mxu0  ;;  %v738_v22 = vpop.f32.mrb[23].mxu1 }
 0x1d2   :  { %v1812_v15 = vpop.eup %1811  ;;  %v1196_v16 = vmul.f32 0.5, %v1164_v9  ;;  %v1274_v23 = vadd.f32 %v1238_v11, %v1237_v8  ;;  %v1689_v32 = vadd.f32 %v738_v22, %v2130_v30  ;;  %v1060_v33 = vpop.f32.mrb[23].mxu0  ;;  %v1239_v34 = vmul.f32 %v2142_v17, %v1195_v12 }
 0x1d3   :  { %v1814_v24 = vpop.eup %1813  ;;  %v1165_v27 = vadd.f32 1.0, %v1812_v15  ;;  %v1108_v31 = vmul.f32 0.5, %v1686_v13  ;;  %1823 = vtanh.f32 %v1107_v18  ;;  %v1688_v35 = vadd.f32 %v1687_v19, %v1058_v21 }
 0x1d4   :  { %v1166_v26 = vadd.f32 1.0, %v1814_v24  ;;  %1275 = vadd.xlane.f32.xlu1 %v1274_v23  ;;  %v1240_v36 = vmul.f32 %v2146_v20, %v1196_v16  ;;  %v1690_v38 = vadd.f32 %v1689_v32, %v1060_v33  ;;  %v742_v25 = vpop.f32.mrb[24].mxu1 }
 0x1d5   :  { %v1197_v37 = vmul.f32 0.5, %v1165_v27  ;;  %1825 = vtanh.f32 %v1108_v31  ;;  %v1816_v28 = vpop.eup %1815  ;;  %v1109_v40 = vmul.f32 0.5, %v1688_v35  ;;  %v1691_v41 = vadd.f32 %v742_v25, %v2126_v29  ;;  %v1064_v42 = vpop.f32.mrb[24].mxu0 }
 0x1d6   :  { %v1198_v39 = vmul.f32 0.5, %v1166_v26  ;;  %v744_v43 = vpop.f32.mrb[25].mxu1  ;;  %v1277_v44 = vadd.f32 %v1240_v36, %v1239_v34  ;;  %v1167_v46 = vadd.f32 1.0, %v1816_v28  ;;  %v1110_v47 = vmul.f32 0.5, %v1690_v38  ;;  %v1066_v49 = vpop.f32.mrb[25].mxu0 }
 0x1d7   :  { %v1818_v45 = vpop.eup %1817  ;;  %v1693_v48 = vadd.f32 %v744_v43, %v2130_v30  ;;  %v1241_v50 = vmul.f32 %v2142_v17, %v1197_v37  ;;  %1827 = vtanh.f32 %v1109_v40  ;;  %v1692_v52 = vadd.f32 %v1691_v41, %v1064_v42 }
 0x1d8   :  { %v1168_v51 = vadd.f32 1.0, %v1818_v45  ;;  %1278 = vadd.xlane.f32.xlu0 %v1277_v44  ;;  %v1242_v53 = vmul.f32 %v2146_v20, %v1198_v39  ;;  %v1199_v54 = vmul.f32 0.5, %v1167_v46  ;;  %1829 = vtanh.f32 %v1110_v47  ;;  %v748_v56 = vpop.f32.mrb[26].mxu1 }
 0x1d9   :  { %v1694_v55 = vadd.f32 %v1693_v48, %v1066_v49  ;;  %v1820_v57 = vpop.eup %1819  ;;  %v1111_v59 = vmul.f32 0.5, %v1692_v52  ;;  %v1695_v60 = vadd.f32 %v748_v56, %v2126_v29  ;;  %v1070_v61 = vpop.f32.mrb[26].mxu0 }
 0x1da   :  { %v1200_v58 = vmul.f32 0.5, %v1168_v51  ;;  %v750_v62 = vpop.f32.mrb[27].mxu1  ;;  %v1280_v63 = vadd.f32 %v1242_v53, %v1241_v50  ;;  %v1822_v0 = vpop.eup %1821  ;;  %v1169_v1 = vadd.f32 1.0, %v1820_v57  ;;  %v1243_v5 = vmul.f32 %v2142_v17, %v1199_v54 }
 0x1db   :  { %v1112_v2 = vmul.f32 0.5, %v1694_v55  ;;  %v1697_v3 = vadd.f32 %v750_v62, %v2130_v30  ;;  %v1072_v4 = vpop.f32.mrb[27].mxu0  ;;  %v1170_v6 = vadd.f32 1.0, %v1822_v0  ;;  %1831 = vtanh.f32 %v1111_v59 }
 0x1dc   :  { %v1696_v7 = vadd.f32 %v1695_v60, %v1070_v61  ;;  %1281 = vadd.xlane.f32.xlu1 %v1280_v63  ;;  %v1244_v8 = vmul.f32 %v2146_v20, %v1200_v58  ;;  %v1201_v9 = vmul.f32 0.5, %v1169_v1  ;;  %v754_v11 = vpop.f32.mrb[28].mxu1 }
 0x1dd   :  { %1833 = vtanh.f32 %v1112_v2  ;;  %v1698_v10 = vadd.f32 %v1697_v3, %v1072_v4  ;;  %v1824_v12 = vpop.eup %1823  ;;  %v1202_v13 = vmul.f32 0.5, %v1170_v6  ;;  %v1699_v15 = vadd.f32 %v754_v11, %v2126_v29  ;;  %v1076_v16 = vpop.f32.mrb[28].mxu0 }
 0x1de   :  { %v1113_v14 = vmul.f32 0.5, %v1696_v7  ;;  %v756_v18 = vpop.f32.mrb[29].mxu1  ;;  %v1283_v19 = vadd.f32 %v1244_v8, %v1243_v5  ;;  %v1171_v22 = vadd.f32 1.0, %v1824_v12  ;;  %v1078_v27 = vpop.f32.mrb[29].mxu0  ;;  %v1245_v31 = vmul.f32 %v2142_v17, %v1201_v9 }
 0x1df   :  { %v1826_v21 = vpop.eup %1825  ;;  %v1114_v23 = vmul.f32 0.5, %v1698_v10  ;;  %v1701_v24 = vadd.f32 %v756_v18, %v2130_v30  ;;  %v1700_v33 = vadd.f32 %v1699_v15, %v1076_v16  ;;  %v1246_v34 = vmul.f32 %v2146_v20, %v1202_v13 }
 0x1e0   :  { %v1172_v32 = vadd.f32 1.0, %v1826_v21  ;;  %1835 = vtanh.f32 %v1113_v14  ;;  %1284 = vadd.xlane.f32.xlu0 %v1283_v19  ;;  %v1203_v26 = vmul.f32 0.5, %v1171_v22  ;;  %v760_v36 = vpop.f32.mrb[30].mxu1 }
 0x1e1   :  { %1837 = vtanh.f32 %v1114_v23  ;;  %v1702_v35 = vadd.f32 %v1701_v24, %v1078_v27  ;;  %v1828_v37 = vpop.eup %1827  ;;  %v1115_v25 = vmul.f32 0.5, %v1700_v33  ;;  %v1703_v28 = vadd.f32 %v760_v36, %v2126_v29  ;;  %v1082_v39 = vpop.f32.mrb[30].mxu0  ;;  %v2202_v36 = vld [vmem:[#allocation2] ss:$0 sm:$0xff] }
 0x1e2   :  { %v1204_v38 = vmul.f32 0.5, %v1172_v32  ;;  %v762_v40 = vpop.f32.mrb[31].mxu1  ;;  %v1286_v41 = vadd.f32 %v1246_v34, %v1245_v31  ;;  %v1830_v42 = vpop.eup %1829  ;;  %v1173_v43 = vadd.f32 1.0, %v1828_v37  ;;  %v1247_v47 = vmul.f32 %v2142_v17, %v1203_v26 }
 0x1e3   :  { %v1116_v44 = vmul.f32 0.5, %v1702_v35  ;;  %v1705_v45 = vadd.f32 %v762_v40, %v2130_v30  ;;  %v1084_v46 = vpop.f32.mrb[31].mxu0  ;;  %v1174_v48 = vadd.f32 1.0, %v1830_v42  ;;  %1839 = vtanh.f32 %v1115_v25 }
 0x1e4   :  { %v1704_v49 = vadd.f32 %v1703_v28, %v1082_v39  ;;  %1287 = vadd.xlane.f32.xlu1 %v1286_v41  ;;  %v1248_v50 = vmul.f32 %v2146_v20, %v1204_v38  ;;  %v1205_v51 = vmul.f32 0.5, %v1173_v43 }
 0x1e5   :  { %1841 = vtanh.f32 %v1116_v44  ;;  %v1706_v29 = vadd.f32 %v1705_v45, %v1084_v46  ;;  %v1832_v52 = vpop.eup %1831  ;;  %v1206_v53 = vmul.f32 0.5, %v1174_v48 }
 0x1e6   :  { %v1117_v54 = vmul.f32 0.5, %v1704_v49  ;;  %v1289_v55 = vadd.f32 %v1248_v50, %v1247_v47  ;;  %v1175_v57 = vadd.f32 1.0, %v1832_v52  ;;  %v1249_v30 = vmul.f32 %v2142_v17, %v1205_v51 }
 0x1e7   :  { %v1834_v56 = vpop.eup %1833  ;;  %v1118_v58 = vmul.f32 0.5, %v1706_v29  ;;  %v1250_v60 = vmul.f32 %v2146_v20, %v1206_v53 }
 0x1e8   :  { %v1176_v59 = vadd.f32 1.0, %v1834_v56  ;;  %1843 = vtanh.f32 %v1117_v54  ;;  %1290 = vadd.xlane.f32.xlu0 %v1289_v55  ;;  %v1207_v61 = vmul.f32 0.5, %v1175_v57 }
 0x1e9   :  { %1845 = vtanh.f32 %v1118_v58  ;;  %v1292_v0 = vadd.f32 %v1250_v60, %v1249_v30 }
 0x1ea   :  { %v1836_v62 = vpop.eup %1835  ;;  %v1208_v63 = vmul.f32 0.5, %v1176_v59  ;;  %v1251_v3 = vmul.f32 %v2142_v17, %v1207_v61 }
 0x1eb   :  { %v1838_v1 = vpop.eup %1837  ;;  %v1177_v2 = vadd.f32 1.0, %v1836_v62  ;;  %1293 = vadd.xlane.f32.xlu1 %v1292_v0 }
 0x1ec   :  { %v1178_v4 = vadd.f32 1.0, %v1838_v1  ;;  %v1252_v5 = vmul.f32 %v2146_v20, %v1208_v63 }
 0x1ed   :  { %v1209_v6 = vmul.f32 0.5, %v1177_v2  ;;  %v1840_v7 = vpop.eup %1839 }
 0x1ee   :  { %v1210_v8 = vmul.f32 0.5, %v1178_v4  ;;  %v1295_v9 = vadd.f32 %v1252_v5, %v1251_v3  ;;  %v1179_v11 = vadd.f32 1.0, %v1840_v7 }
 0x1ef   :  { %v1842_v10 = vpop.eup %1841  ;;  %v1253_v12 = vmul.f32 %v2142_v17, %v1209_v6 }
 0x1f0   :  { %v1180_v13 = vadd.f32 1.0, %v1842_v10  ;;  %1296 = vadd.xlane.f32.xlu0 %v1295_v9  ;;  %v1254_v14 = vmul.f32 %v2146_v20, %v1210_v8  ;;  %v1211_v15 = vmul.f32 0.5, %v1179_v11 }
 0x1f2   :  { %v1844_v16 = vpop.eup %1843  ;;  %v1212_v18 = vmul.f32 0.5, %v1180_v13  ;;  %v1298_v19 = vadd.f32 %v1254_v14, %v1253_v12  ;;  %v1255_v23 = vmul.f32 %v2142_v17, %v1211_v15 }
 0x1f3   :  { %v1846_v21 = vpop.eup %1845  ;;  %v1181_v22 = vadd.f32 1.0, %v1844_v16 }
 0x1f4   :  { %v1182_v24 = vadd.f32 1.0, %v1846_v21  ;;  %1299 = vadd.xlane.f32.xlu1 %v1298_v19  ;;  %v1256_v27 = vmul.f32 %v2146_v20, %v1212_v18 }
 0x1f5   :  { %v1213_v31 = vmul.f32 0.5, %v1181_v22 }
 0x1f6   :  { %v1214_v32 = vmul.f32 0.5, %v1182_v24  ;;  %v1301_v33 = vadd.f32 %v1256_v27, %v1255_v23 }
 0x1f7   :  { %v1257_v34 = vmul.f32 %v2142_v17, %v1213_v31 }
 0x1f8   :  { %1302 = vadd.xlane.f32.xlu0 %v1301_v33  ;;  %v1258_v26 = vmul.f32 %v2146_v20, %v1214_v32 }
 0x1fa   :  { %v1304_v35 = vadd.f32 %v1258_v26, %v1257_v34 }
 0x1fc   :  { %1305 = vadd.xlane.f32.xlu1 %v1304_v35 }
 0x24d   :  { %v1261_v37 = vpop.xlane.xlu0 %1260 }
 0x24e   :  { %v1314_v38 = vadd.f32 %v2202_v36, %v1261_v37 }
 0x250   :  { %v1330_v25 = vmul.f32 0.5, %v1314_v38 }
 0x251   :  { %v1264_v28 = vpop.xlane.xlu0 %1263 }
 0x252   :  { %1847 = vtanh.f32 %v1330_v25  ;;  %v1315_v39 = vadd.f32 %v2202_v36, %v1264_v28 }
 0x254   :  { %v1331_v40 = vmul.f32 0.5, %v1315_v39 }
 0x255   :  { %v1267_v41 = vpop.xlane.xlu1 %1266 }
 0x256   :  { %1849 = vtanh.f32 %v1331_v40  ;;  %v1316_v17 = vadd.f32 %v2202_v36, %v1267_v41 }
 0x258   :  { %v1332_v42 = vmul.f32 0.5, %v1316_v17 }
 0x259   :  { %v1270_v43 = vpop.xlane.xlu1 %1269 }
 0x25a   :  { %1851 = vtanh.f32 %v1332_v42  ;;  %v1317_v20 = vadd.f32 %v2202_v36, %v1270_v43 }
 0x25c   :  { %v1848_v44 = vpop.eup %1847  ;;  %v1333_v45 = vmul.f32 0.5, %v1317_v20 }
 0x25d   :  { %v1362_v46 = vadd.f32 1.0, %v1848_v44  ;;  %v1273_v47 = vpop.xlane.xlu0 %1272 }
 0x25e   :  { %1853 = vtanh.f32 %v1333_v45  ;;  %v1318_v48 = vadd.f32 %v2202_v36, %v1273_v47 }
 0x25f   :  { %v1378_v49 = vmul.f32 0.5, %v1362_v46 }
 0x260   :  { %v1850_v50 = vpop.eup %1849  ;;  %v1334_v51 = vmul.f32 0.5, %v1318_v48 }
 0x261   :  { %1395 = vst.msk [vmem:[#allocation11] sm:$0xff] %vm1394_vm1, %v1378_v49  ;;  %v1363_v29 = vadd.f32 1.0, %v1850_v50  ;;  %v1276_v52 = vpop.xlane.xlu1 %1275 }
 0x262   :  { %1855 = vtanh.f32 %v1334_v51  ;;  %v1319_v53 = vadd.f32 %v2202_v36, %v1276_v52 }
 0x263   :  { %v1379_v54 = vmul.f32 0.5, %v1363_v29 }
 0x264   :  { %v1852_v55 = vpop.eup %1851  ;;  %v1335_v56 = vmul.f32 0.5, %v1319_v53 }
 0x265   :  { %1396 = vst.msk [vmem:[#allocation11 + $0x8] sm:$0xff] %vm1394_vm1, %v1379_v54  ;;  %v1364_v57 = vadd.f32 1.0, %v1852_v55  ;;  %v1279_v58 = vpop.xlane.xlu0 %1278 }
 0x266   :  { %1857 = vtanh.f32 %v1335_v56  ;;  %v1320_v30 = vadd.f32 %v2202_v36, %v1279_v58 }
 0x267   :  { %v1380_v59 = vmul.f32 0.5, %v1364_v57 }
 0x268   :  { %v1854_v60 = vpop.eup %1853  ;;  %v1336_v61 = vmul.f32 0.5, %v1320_v30 }
 0x269   :  { %1397 = vst.msk [vmem:[#allocation11 + $0x10] sm:$0xff] %vm1394_vm1, %v1380_v59  ;;  %v1365_v62 = vadd.f32 1.0, %v1854_v60  ;;  %v1282_v63 = vpop.xlane.xlu1 %1281 }
 0x26a   :  { %1859 = vtanh.f32 %v1336_v61  ;;  %v1321_v0 = vadd.f32 %v2202_v36, %v1282_v63 }
 0x26b   :  { %v1381_v1 = vmul.f32 0.5, %v1365_v62 }
 0x26c   :  { %v1856_v2 = vpop.eup %1855  ;;  %v1337_v3 = vmul.f32 0.5, %v1321_v0 }
 0x26d   :  { %1398 = vst.msk [vmem:[#allocation11 + $0x18] sm:$0xff] %vm1394_vm1, %v1381_v1  ;;  %v1366_v4 = vadd.f32 1.0, %v1856_v2  ;;  %v1285_v5 = vpop.xlane.xlu0 %1284 }
 0x26e   :  { %1861 = vtanh.f32 %v1337_v3  ;;  %v1322_v6 = vadd.f32 %v2202_v36, %v1285_v5 }
 0x26f   :  { %v1382_v7 = vmul.f32 0.5, %v1366_v4 }
 0x270   :  { %v1858_v8 = vpop.eup %1857  ;;  %v1338_v9 = vmul.f32 0.5, %v1322_v6 }
 0x271   :  { %1399 = vst.msk [vmem:[#allocation11 + $0x20] sm:$0xff] %vm1394_vm1, %v1382_v7  ;;  %v1367_v10 = vadd.f32 1.0, %v1858_v8  ;;  %v1288_v11 = vpop.xlane.xlu1 %1287 }
 0x272   :  { %1863 = vtanh.f32 %v1338_v9  ;;  %v1323_v12 = vadd.f32 %v2202_v36, %v1288_v11 }
 0x273   :  { %v1383_v13 = vmul.f32 0.5, %v1367_v10 }
 0x274   :  { %v1860_v14 = vpop.eup %1859  ;;  %v1339_v15 = vmul.f32 0.5, %v1323_v12 }
 0x275   :  { %1400 = vst.msk [vmem:[#allocation11 + $0x28] sm:$0xff] %vm1394_vm1, %v1383_v13  ;;  %v1368_v16 = vadd.f32 1.0, %v1860_v14  ;;  %v1291_v18 = vpop.xlane.xlu0 %1290 }
 0x276   :  { %1865 = vtanh.f32 %v1339_v15  ;;  %v1324_v19 = vadd.f32 %v2202_v36, %v1291_v18 }
 0x277   :  { %v1384_v21 = vmul.f32 0.5, %v1368_v16 }
 0x278   :  { %v1862_v22 = vpop.eup %1861  ;;  %v1340_v23 = vmul.f32 0.5, %v1324_v19  ;;  %v1294_v27 = vpop.xlane.xlu1 %1293 }
 0x279   :  { %1401 = vst.msk [vmem:[#allocation11 + $0x30] sm:$0xff] %vm1394_vm1, %v1384_v21  ;;  %v1369_v24 = vadd.f32 1.0, %v1862_v22  ;;  %v1325_v31 = vadd.f32 %v2202_v36, %v1294_v27 }
 0x27a   :  { %1867 = vtanh.f32 %v1340_v23 }
 0x27b   :  { %v1385_v32 = vmul.f32 0.5, %v1369_v24  ;;  %v1341_v34 = vmul.f32 0.5, %v1325_v31 }
 0x27c   :  { %v1864_v33 = vpop.eup %1863 }
 0x27d   :  { %1402 = vst.msk [vmem:[#allocation11 + $0x38] sm:$0xff] %vm1394_vm1, %v1385_v32  ;;  %v1370_v26 = vadd.f32 1.0, %v1864_v33  ;;  %v1297_v35 = vpop.xlane.xlu0 %1296  ;;  %1869 = vtanh.f32 %v1341_v34 }
 0x27e   :  { %v1326_v37 = vadd.f32 %v2202_v36, %v1297_v35 }
 0x27f   :  { %v1386_v38 = vmul.f32 0.5, %v1370_v26 }
 0x280   :  { %v1866_v25 = vpop.eup %1865  ;;  %v1342_v28 = vmul.f32 0.5, %v1326_v37 }
 0x281   :  { %1403 = vst.msk [vmem:[#allocation11 + $0x40] sm:$0xff] %vm1394_vm1, %v1386_v38  ;;  %v1371_v39 = vadd.f32 1.0, %v1866_v25  ;;  %v1300_v40 = vpop.xlane.xlu1 %1299 }
 0x282   :  { %1871 = vtanh.f32 %v1342_v28  ;;  %v1327_v41 = vadd.f32 %v2202_v36, %v1300_v40 }
 0x283   :  { %v1387_v17 = vmul.f32 0.5, %v1371_v39 }
 0x284   :  { %v1868_v42 = vpop.eup %1867  ;;  %v1343_v43 = vmul.f32 0.5, %v1327_v41 }
 0x285   :  { %1404 = vst.msk [vmem:[#allocation11 + $0x48] sm:$0xff] %vm1394_vm1, %v1387_v17  ;;  %v1372_v20 = vadd.f32 1.0, %v1868_v42  ;;  %v1303_v44 = vpop.xlane.xlu0 %1302 }
 0x286   :  { %1873 = vtanh.f32 %v1343_v43  ;;  %v1328_v45 = vadd.f32 %v2202_v36, %v1303_v44 }
 0x287   :  { %v1388_v46 = vmul.f32 0.5, %v1372_v20  ;;  %v1870_v47 = vpop.eup %1869 }
 0x288   :  { %v1344_v48 = vmul.f32 0.5, %v1328_v45  ;;  %v1373_v49 = vadd.f32 1.0, %v1870_v47 }
 0x289   :  { %1405 = vst.msk [vmem:[#allocation11 + $0x50] sm:$0xff] %vm1394_vm1, %v1388_v46  ;;  %v1306_v50 = vpop.xlane.xlu1 %1305 }
 0x28a   :  { %1875 = vtanh.f32 %v1344_v48  ;;  %v1329_v51 = vadd.f32 %v2202_v36, %v1306_v50  ;;  %v1389_v29 = vmul.f32 0.5, %v1373_v49 }
 0x28c   :  { %v1872_v52 = vpop.eup %1871  ;;  %v1345_v53 = vmul.f32 0.5, %v1329_v51  ;;  %1406 = vst.msk [vmem:[#allocation11 + $0x58] sm:$0xff] %vm1394_vm1, %v1389_v29 }
 0x28d   :  { %v1374_v54 = vadd.f32 1.0, %v1872_v52 }
 0x28e   :  { %1877 = vtanh.f32 %v1345_v53 }
 0x28f   :  { %v1390_v55 = vmul.f32 0.5, %v1374_v54 }
 0x290   :  { %v1874_v56 = vpop.eup %1873 }
 0x291   :  { %1407 = vst.msk [vmem:[#allocation11 + $0x60] sm:$0xff] %vm1394_vm1, %v1390_v55  ;;  %v1375_v57 = vadd.f32 1.0, %v1874_v56 }
 0x293   :  { %v1391_v58 = vmul.f32 0.5, %v1375_v57 }
 0x294   :  { %v1876_v30 = vpop.eup %1875 }
 0x295   :  { %1408 = vst.msk [vmem:[#allocation11 + $0x68] sm:$0xff] %vm1394_vm1, %v1391_v58  ;;  %v1376_v59 = vadd.f32 1.0, %v1876_v30 }
 0x297   :  { %v1392_v60 = vmul.f32 0.5, %v1376_v59 }
 0x298   :  { %v1878_v61 = vpop.eup %1877 }
 0x299   :  { %1409 = vst.msk [vmem:[#allocation11 + $0x70] sm:$0xff] %vm1394_vm1, %v1392_v60  ;;  %v1377_v36 = vadd.f32 1.0, %v1878_v61 }
 0x29b   :  { %v1393_v62 = vmul.f32 0.5, %v1377_v36 }
 0x29d   :  { %1410 = vst.msk [vmem:[#allocation11 + $0x78] sm:$0xff] %vm1394_vm1, %v1393_v62 }
 0x29e   :  { %1978 = shalt.err (!%p1975_p8)
}
 0x29f   :  { %s1979_s20 = scalar_lea.hbm %s2253_s5, 2048 }
 0x2a0   :  { %p1980_p9 = scmp.ne.s32.totalorder %s2253_s5, %s1979_s20  ;;  %p1983_p10 = scmp.lt.u32.totalorder %s1979_s20, %s2253_s5 }
 0x2a2   :  { %p1985_p11 = pnand %p1983_p10, %p1980_p9 }
 0x2a4   :  { %1988 = shalt.err (!%p1985_p11)
}
 0x2a5   :  { %s2007_s25 = smov 128   ;;  %s2008_s26 = smov 8  }
 0x2a6   :  { %1422 = dma.vmem_to_hbm [thread:$0]  %s1417_s17, 2048, %s2253_s5, [#allocation5], %s2007_s25, %s2007_s25, %s2008_s26  }
 0x2a7   :  { %1995 = dma.done.wait [#allocation5], 2048  }
 0x2a8   :  { %1996 = vsyncadd [#allocation5], 4294965248 }
 0x2a9   :  { %1426 = vsyncpa [#allocation4], 1 }
 0x2aa   :  { %1427 = vsyncpa [#allocation7], 1 }
 0x2ab   :  { %1428 = vsyncpa [#allocation10], 1 }
 0x2ac   :  { %1429 = vsyncpa [#allocation5], 1 }

</bundles_post_ra>
